<compile_context>
chip_gen: v5e
topology: v5e:2x2
jax: 0.10.0
libtpu: 0.0.40
codegen_flags: <defaults>
</compile_context>

<pallas_src>
import functools

import jax
import jax.numpy as jnp
from jax.experimental import pallas as pl
from jax.experimental.pallas import tpu as pltpu


# ----------------------------------------------------------------------------
# Small helpers
# ----------------------------------------------------------------------------

def _round_up(x, m):
    return (x + m - 1) // m * m


def _pick_tile(n, preferred, minimum=8):
    """Largest divisor of n that is <= preferred and a multiple of `minimum`
    (falls back to n itself if none exists)."""
    for c in range(preferred, minimum - 1, -minimum):
        if n % c == 0:
            return c
    return n


# ----------------------------------------------------------------------------
# Pallas kernels
# ----------------------------------------------------------------------------

def _matmul_bn_kernel(x_ref, w_ref, scale_ref, shift_ref, o_ref, acc_ref, *, relu):
    """acc += x @ w over the K grid axis; epilogue = acc*scale + shift (+ReLU)."""
    @pl.when(pl.program_id(1) == 0)
    def _init():
        acc_ref[...] = jnp.zeros_like(acc_ref)

    acc_ref[...] += jnp.dot(x_ref[...], w_ref[...],
                            preferred_element_type=jnp.float32)

    @pl.when(pl.program_id(1) == pl.num_programs(1) - 1)
    def _finalize():
        out = acc_ref[...] * scale_ref[...] + shift_ref[...]
        if relu:
            out = jnp.maximum(out, 0.0)
        o_ref[...] = out


def _maxpool_window_kernel(p_ref, o_ref):
    """Max over the window axis. p: (tm, KK, C) -> o: (tm, C)."""
    o_ref[...] = jnp.max(p_ref[...], axis=1)


def _add_relu_gap_kernel(y_ref, d_ref, o_ref, acc_ref, *, inv_hw):
    """Fused residual add + ReLU + global average pool over the spatial axis."""
    @pl.when(pl.program_id(0) == 0)
    def _init():
        acc_ref[...] = jnp.zeros_like(acc_ref)

    z = jnp.maximum(y_ref[...] + d_ref[...], 0.0)
    acc_ref[...] += jnp.sum(z, axis=1)

    @pl.when(pl.program_id(0) == pl.num_programs(0) - 1)
    def _finalize():
        o_ref[...] = acc_ref[...] * inv_hw


# ----------------------------------------------------------------------------
# Pallas call wrappers
# ----------------------------------------------------------------------------

def _matmul_bn(x, w, scale, shift, relu):
    """out = relu((x @ w) * scale + shift).  x: (M,K) bf16, w: (K,N) bf16,
    scale/shift: (1,N) f32.  K and N must be multiples of 128 (padded by caller)."""
    M0, K = x.shape
    _, N = w.shape
    M = _round_up(M0, 8)
    if M != M0:
        x = jnp.pad(x, ((0, M - M0), (0, 0)))

    tm = _pick_tile(M, 256, 8)
    tk = _pick_tile(K, 512, 128)
    grid = (M // tm, K // tk)

    out = pl.pallas_call(
        functools.partial(_matmul_bn_kernel, relu=relu),
        out_shape=jax.ShapeDtypeStruct((M, N), jnp.float32),
        grid=grid,
        in_specs=[
            pl.BlockSpec((tm, tk), lambda i, k: (i, k)),
            pl.BlockSpec((tk, N), lambda i, k: (k, 0)),
            pl.BlockSpec((1, N), lambda i, k: (0, 0)),
            pl.BlockSpec((1, N), lambda i, k: (0, 0)),
        ],
        out_specs=pl.BlockSpec((tm, N), lambda i, k: (i, 0)),
        scratch_shapes=[pltpu.VMEM((tm, N), jnp.float32)],
        compiler_params=pltpu.CompilerParams(
            dimension_semantics=("parallel", "arbitrary")),
    )(x, w, scale, shift)
    return out[:M0] if M != M0 else out


def _extract_patches(x, kh, kw, stride, pad, pad_value=0.0):
    """im2col patch extraction (glue, static slicing only). x: NHWC."""
    B, H, W, C = x.shape
    xp = jnp.pad(x, ((0, 0), (pad, pad), (pad, pad), (0, 0)),
                 constant_values=pad_value)
    oh = (H + 2 * pad - kh) // stride + 1
    ow = (W + 2 * pad - kw) // stride + 1
    cols = []
    for i in range(kh):
        for j in range(kw):
            cols.append(
                xp[:, i:i + (oh - 1) * stride + 1:stride,
                      j:j + (ow - 1) * stride + 1:stride, :])
    patches = jnp.stack(cols, axis=3)          # (B, oh, ow, kh*kw, C)
    return patches, oh, ow


def conv_bn(x, w, scale, shift, *, stride, pad, relu):
    """Conv2d + folded BatchNorm (+ReLU) as a Pallas tiled/accumulating matmul.

    x is NHWC, possibly channel-padded (real cin channels first, zeros after).
    Returns NHWC output with channels zero-padded up to a multiple of 128.
    """
    kh, kw, cin, cout = w.shape
    B, H, W, Cx = x.shape

    if kh == 1 and kw == 1 and stride == 1 and pad == 0:
        # 1x1 conv: no im2col; use the padded channel axis directly
        # (extra channels are exactly zero and get zero weight rows).
        oh, ow = H, W
        k_real = Cx
        p2d = x.reshape(B * H * W, Cx)
        w2d = jnp.pad(w.reshape(cin, cout), ((0, Cx - cin), (0, 0)))
    else:
        xr = x[..., :cin]                      # drop pad channels before im2col
        patches, oh, ow = _extract_patches(xr, kh, kw, stride, pad)
        k_real = kh * kw * cin
        p2d = patches.reshape(B * oh * ow, k_real)
        w2d = w.reshape(k_real, cout)

    k_pad = _round_up(k_real, 128)
    n_pad = _round_up(cout, 128)
    p2d = jnp.pad(p2d, ((0, 0), (0, k_pad - k_real))).astype(jnp.bfloat16)
    w2d = jnp.pad(w2d, ((0, k_pad - k_real), (0, n_pad - cout))).astype(jnp.bfloat16)
    sc = jnp.pad(scale.reshape(1, -1), ((0, 0), (0, n_pad - cout)))
    sh = jnp.pad(shift.reshape(1, -1), ((0, 0), (0, n_pad - cout)))

    out = _matmul_bn(p2d, w2d, sc, sh, relu)
    return out.reshape(B, oh, ow, n_pad)


def maxpool(x, k, stride, pad):
    """3x3/2 max pool.  Input is post-ReLU (>= 0), so 0-padding == -inf padding."""
    B, H, W, C = x.shape
    patches, oh, ow = _extract_patches(x, k, k, stride, pad, pad_value=0.0)
    M = B * oh * ow
    p = patches.reshape(M, k * k, C)
    tm = _pick_tile(M, 64, 8)
    out = pl.pallas_call(
        _maxpool_window_kernel,
        out_shape=jax.ShapeDtypeStruct((M, C), jnp.float32),
        grid=(M // tm,),
        in_specs=[pl.BlockSpec((tm, k * k, C), lambda i: (i, 0, 0))],
        out_specs=pl.BlockSpec((tm, C), lambda i: (i, 0)),
        compiler_params=pltpu.CompilerParams(dimension_semantics=("parallel",)),
    )(p)
    return out.reshape(B, oh, ow, C)


def add_relu_global_avg_pool(y, d):
    """Fused: relu(y + d) -> AdaptiveAvgPool2d((1,1)) -> flatten.  -> (B, C)."""
    B, H, W, C = y.shape
    HW = H * W
    yr = y.reshape(B, HW, C)
    dr = d.reshape(B, HW, C)
    ts = _pick_tile(HW, 256, 8)
    return pl.pallas_call(
        functools.partial(_add_relu_gap_kernel, inv_hw=1.0 / HW),
        out_shape=jax.ShapeDtypeStruct((B, C), jnp.float32),
        grid=(HW // ts,),
        in_specs=[pl.BlockSpec((B, ts, C), lambda s: (0, s, 0)),
                  pl.BlockSpec((B, ts, C), lambda s: (0, s, 0))],
        out_specs=pl.BlockSpec((B, C), lambda s: (0, 0)),
        scratch_shapes=[pltpu.VMEM((B, C), jnp.float32)],
        compiler_params=pltpu.CompilerParams(dimension_semantics=("arbitrary",)),
    )(yr, dr)


def linear(x, W, b):
    """nn.Linear on channel-padded features: x (B, Cx) @ W (in_f, out_f) + b."""
    B, Cx = x.shape
    in_f, out_f = W.shape
    k_pad = _round_up(max(Cx, in_f), 128)
    n_pad = _round_up(out_f, 128)
    x_p = jnp.pad(x, ((0, 0), (0, k_pad - Cx))).astype(jnp.bfloat16)
    w_p = jnp.pad(W, ((0, k_pad - in_f), (0, n_pad - out_f))).astype(jnp.bfloat16)
    sc = jnp.ones((1, n_pad), jnp.float32)
    sh = jnp.pad(b.reshape(1, -1), ((0, 0), (0, n_pad - out_f)))
    out = _matmul_bn(x_p, w_p, sc, sh, relu=False)
    return out[:, :out_f]


# ----------------------------------------------------------------------------
# Parameter init (deterministic, synthetic) and forward
# ----------------------------------------------------------------------------

_BN_EPS = 1e-5


def _fold_bn(gamma, beta, mu, var):
    scale = gamma / jnp.sqrt(var + _BN_EPS)
    shift = beta - mu * scale
    return (scale.reshape(1, -1).astype(jnp.float32),
            shift.reshape(1, -1).astype(jnp.float32))


def _conv_w(key, kh, kw, cin, cout):
    fan_in = kh * kw * cin
    return (jax.random.normal(key, (kh, kw, cin, cout), jnp.float32)
            / jnp.sqrt(jnp.float32(fan_in)))


def _bn_params(key, c):
    k1, k2, k3, k4 = jax.random.split(key, 4)
    gamma = 1.0 + 0.1 * jax.random.normal(k1, (c,), jnp.float32)
    beta = 0.1 * jax.random.normal(k2, (c,), jnp.float32)
    mu = 0.1 * jax.random.normal(k3, (c,), jnp.float32)
    var = 1.0 + 0.1 * jax.random.uniform(k4, (c,), jnp.float32)
    return _fold_bn(gamma, beta, mu, var)


def init_params(key, embed_size):
    ks = jax.random.split(key, 12)
    p = {}
    # Stem: 7x7/2 conv 3->16, BN
    p["stem_w"] = _conv_w(ks[0], 7, 7, 3, 16)
    p["stem_s"], p["stem_b"] = _bn_params(ks[1], 16)
    # Bottleneck block: 1x1 16->8, 3x3 8->8, 1x1 8->32, downsample 1x1 16->32
    p["b1_w"] = _conv_w(ks[2], 1, 1, 16, 8)
    p["b1_s"], p["b1_b"] = _bn_params(ks[3], 8)
    p["b2_w"] = _conv_w(ks[4], 3, 3, 8, 8)
    p["b2_s"], p["b2_b"] = _bn_params(ks[5], 8)
    p["b3_w"] = _conv_w(ks[6], 1, 1, 8, 32)
    p["b3_s"], p["b3_b"] = _bn_params(ks[7], 32)
    p["bd_w"] = _conv_w(ks[8], 1, 1, 16, 32)
    p["bd_s"], p["bd_b"] = _bn_params(ks[9], 32)
    # Embed linear: in_features=32 -> embed_size
    p["emb_w"] = (jax.random.normal(ks[10], (32, embed_size), jnp.float32)
                  / jnp.sqrt(jnp.float32(32)))
    p["emb_b"] = 0.1 * jax.random.normal(ks[11], (embed_size,), jnp.float32)
    return p


def encoder_cnn_forward(images_nchw, p):
    # layout: input NCHW (PyTorch convention) -> NHWC for kernels; all
    # activations keep channels zero-padded to 128 for lane-dense stores.
    x = jnp.transpose(images_nchw, (0, 2, 3, 1)).astype(jnp.float32)
    # --- backbone (self.resnet) ---
    x = conv_bn(x, p["stem_w"], p["stem_s"], p["stem_b"], stride=2, pad=3, relu=True)
    x = maxpool(x, 3, 2, 1)
    identity = x
    y = conv_bn(x, p["b1_w"], p["b1_s"], p["b1_b"], stride=1, pad=0, relu=True)
    y = conv_bn(y, p["b2_w"], p["b2_s"], p["b2_b"], stride=1, pad=1, relu=True)
    y = conv_bn(y, p["b3_w"], p["b3_s"], p["b3_b"], stride=1, pad=0, relu=False)
    d = conv_bn(identity, p["bd_w"], p["bd_s"], p["bd_b"], stride=1, pad=0, relu=False)
    # --- residual add + ReLU + AdaptiveAvgPool2d((1,1)) + .view(B,-1), fused ---
    feats = add_relu_global_avg_pool(y, d)     # (B, 128) padded, real channels = 32
    # --- self.embed ---
    return linear(feats, p["emb_w"], p["emb_b"])


# ----------------------------------------------------------------------------
# Pure-JAX reference (for correctness checking only)
# ----------------------------------------------------------------------------

def _ref_forward(images_nchw, p):
    x = jnp.transpose(images_nchw, (0, 2, 3, 1)).astype(jnp.float32)

    def conv(x, w, s, b, stride, pad, relu):
        y = jax.lax.conv_general_dilated(
            x, w, (stride, stride), [(pad, pad), (pad, pad)],
            dimension_numbers=("NHWC", "HWIO", "NHWC"),
            precision=jax.lax.Precision.HIGHEST)
        y = y * s.reshape(1, 1, 1, -1) + b.reshape(1, 1, 1, -1)
        return jnp.maximum(y, 0.0) if relu else y

    x = conv(x, p["stem_w"], p["stem_s"], p["stem_b"], 2, 3, True)
    x = jax.lax.reduce_window(x, -jnp.inf, jax.lax.max, (1, 3, 3, 1), (1, 2, 2, 1),
                              [(0, 0), (1, 1), (1, 1), (0, 0)])
    idn = x
    y = conv(x, p["b1_w"], p["b1_s"], p["b1_b"], 1, 0, True)
    y = conv(y, p["b2_w"], p["b2_s"], p["b2_b"], 1, 1, True)
    y = conv(y, p["b3_w"], p["b3_s"], p["b3_b"], 1, 0, False)
    d = conv(idn, p["bd_w"], p["bd_s"], p["bd_b"], 1, 0, False)
    x = jnp.maximum(y + d, 0.0)
    feats = jnp.mean(x, axis=(1, 2))
    return jnp.dot(feats, p["emb_w"],
                   precision=jax.lax.Precision.HIGHEST) + p["emb_b"]


# ----------------------------------------------------------------------------
if __name__ == "__main__":
    key = jax.random.PRNGKey(0)
    k_img, k_par = jax.random.split(key)

    embed_size = 16
    images = jax.random.normal(k_img, (2, 3, 32, 32), jnp.float32)  # NCHW
    params = init_params(k_par, embed_size)

    fwd = jax.jit(encoder_cnn_forward)
    out = jax.block_until_ready(fwd(images, params))

    assert out.shape == (2, embed_size), out.shape

    ref = jax.block_until_ready(_ref_forward(images, params))
    assert jnp.all(jnp.isfinite(out))
    # Tolerance accounts for bf16 MXU inputs (f32 accumulation) vs the f32
    # HIGHEST-precision reference.
    assert jnp.allclose(out, ref, rtol=3e-2, atol=3e-2), (
        f"max abs diff {jnp.max(jnp.abs(out - ref))}")

    print("KERNEL_OK")
</pallas_src>

<mosaic_0001>
module attributes {stable_mosaic.version = 11 : i64} {
  func.func @_matmul_bn_kernel(%arg0: i32, %arg1: i32, %arg2: memref<256x256xbf16, #tpu.memory_space<vmem>>, %arg3: memref<256x128xbf16, #tpu.memory_space<vmem>>, %arg4: memref<1x128xf32, #tpu.memory_space<vmem>>, %arg5: memref<1x128xf32, #tpu.memory_space<vmem>>, %arg6: memref<256x128xf32, #tpu.memory_space<vmem>>, %arg7: memref<256x128xf32, #tpu.memory_space<vmem>>) attributes {dimension_semantics = [#tpu.dimension_semantics<parallel>, #tpu.dimension_semantics<arbitrary>], iteration_bounds = array<i64: 2, 1>, scalar_prefetch = 0 : i64, scratch_operands = 1 : i64, tpu.core_type = #tpu.core_type<tc>, window_params = [{transform_indices = @transform_0, window_bounds = array<i64: 256, 256>}, {transform_indices = @transform_1, window_bounds = array<i64: 256, 128>}, {pipeline_mode = #tpu.pipeline_mode<synchronous>, transform_indices = @transform_2, window_bounds = array<i64: 1, 128>}, {pipeline_mode = #tpu.pipeline_mode<synchronous>, transform_indices = @transform_3, window_bounds = array<i64: 1, 128>}, {transform_indices = @transform_4, window_bounds = array<i64: 256, 128>}]} {
    %c0_i32 = arith.constant 0 : i32
    %0 = arith.cmpi eq, %arg1, %c0_i32 : i32
    %1 = arith.extui %0 : i1 to i32
    %c0_i32_0 = arith.constant 0 : i32
    %2 = arith.cmpi ne, %1, %c0_i32_0 : i32
    scf.if %2 {
      %cst_10 = arith.constant 0.000000e+00 : f32
      %12 = vector.broadcast %cst_10 : f32 to vector<256x128xf32>
      %c0_11 = arith.constant 0 : index
      %c0_12 = arith.constant 0 : index
      %13 = vector.load %arg7[%c0_11, %c0_12] : memref<256x128xf32, #tpu.memory_space<vmem>>, vector<256x128xf32>
      tpu.vector_store %arg7[%c0_11, %c0_12], %12 {strides = array<i32>} : memref<256x128xf32, #tpu.memory_space<vmem>>, vector<256x128xf32>,
    } else {
    }
    %c0 = arith.constant 0 : index
    %c0_1 = arith.constant 0 : index
    %3 = vector.load %arg7[%c0, %c0_1] : memref<256x128xf32, #tpu.memory_space<vmem>>, vector<256x128xf32>
    %c0_2 = arith.constant 0 : index
    %c0_3 = arith.constant 0 : index
    %4 = vector.load %arg2[%c0_2, %c0_3] : memref<256x256xbf16, #tpu.memory_space<vmem>>, vector<256x256xbf16>
    %c0_4 = arith.constant 0 : index
    %c0_5 = arith.constant 0 : index
    %5 = vector.load %arg3[%c0_4, %c0_5] : memref<256x128xbf16, #tpu.memory_space<vmem>>, vector<256x128xbf16>
    %cst = arith.constant dense<0.000000e+00> : vector<256x128xf32>
    %6 = tpu.matmul %4, %5, %cst {dimension_numbers = #tpu.dot_dimension_numbers<[1], [0], [0], [1], [0, 0, 1, 1], [], []>} : vector<256x256xbf16>, vector<256x128xbf16>, vector<256x128xf32> -> vector<256x128xf32>
    %7 = arith.addf %3, %6 : vector<256x128xf32>
    %c0_6 = arith.constant 0 : index
    %c0_7 = arith.constant 0 : index
    %8 = vector.load %arg7[%c0_6, %c0_7] : memref<256x128xf32, #tpu.memory_space<vmem>>, vector<256x128xf32>
    tpu.vector_store %arg7[%c0_6, %c0_7], %7 {strides = array<i32>} : memref<256x128xf32, #tpu.memory_space<vmem>>, vector<256x128xf32>,
    %c0_i32_8 = arith.constant 0 : i32
    %9 = arith.cmpi eq, %arg1, %c0_i32_8 : i32
    %10 = arith.extui %9 : i1 to i32
    %c0_i32_9 = arith.constant 0 : i32
    %11 = arith.cmpi ne, %10, %c0_i32_9 : i32
    scf.if %11 {
      %c0_10 = arith.constant 0 : index
      %c0_11 = arith.constant 0 : index
      %12 = vector.load %arg7[%c0_10, %c0_11] : memref<256x128xf32, #tpu.memory_space<vmem>>, vector<256x128xf32>
      %c0_12 = arith.constant 0 : index
      %c0_13 = arith.constant 0 : index
      %13 = vector.load %arg4[%c0_12, %c0_13] : memref<1x128xf32, #tpu.memory_space<vmem>>, vector<1x128xf32>
      %14 = vector.broadcast %13 : vector<1x128xf32> to vector<256x128xf32>
      %15 = arith.mulf %12, %14 : vector<256x128xf32>
      %c0_14 = arith.constant 0 : index
      %c0_15 = arith.constant 0 : index
      %16 = vector.load %arg5[%c0_14, %c0_15] : memref<1x128xf32, #tpu.memory_space<vmem>>, vector<1x128xf32>
      %17 = vector.broadcast %16 : vector<1x128xf32> to vector<256x128xf32>
      %18 = arith.addf %15, %17 : vector<256x128xf32>
      %cst_16 = arith.constant 0.000000e+00 : f32
      %19 = vector.broadcast %cst_16 : f32 to vector<256x128xf32>
      %20 = arith.maximumf %18, %19 : vector<256x128xf32>
      %c0_17 = arith.constant 0 : index
      %c0_18 = arith.constant 0 : index
      %21 = vector.load %arg6[%c0_17, %c0_18] : memref<256x128xf32, #tpu.memory_space<vmem>>, vector<256x128xf32>
      tpu.vector_store %arg6[%c0_17, %c0_18], %20 {strides = array<i32>} : memref<256x128xf32, #tpu.memory_space<vmem>>, vector<256x128xf32>,
    } else {
    }
    return
  }
  func.func @transform_0(%arg0: i32, %arg1: i32) -> (i32, i32) {
    %c0_i32 = arith.constant 0 : i32
    return %arg0, %arg1 : i32, i32
  }
  func.func @transform_1(%arg0: i32, %arg1: i32) -> (i32, i32) {
    %c0_i32 = arith.constant 0 : i32
    %c0_i32_0 = arith.constant 0 : i32
    return %arg1, %c0_i32 : i32, i32
  }
  func.func @transform_2(%arg0: i32, %arg1: i32) -> (i32, i32) {
    %c0_i32 = arith.constant 0 : i32
    %c0_i32_0 = arith.constant 0 : i32
    %c0_i32_1 = arith.constant 0 : i32
    return %c0_i32, %c0_i32_0 : i32, i32
  }
  func.func @transform_3(%arg0: i32, %arg1: i32) -> (i32, i32) {
    %c0_i32 = arith.constant 0 : i32
    %c0_i32_0 = arith.constant 0 : i32
    %c0_i32_1 = arith.constant 0 : i32
    return %c0_i32, %c0_i32_0 : i32, i32
  }
  func.func @transform_4(%arg0: i32, %arg1: i32) -> (i32, i32) {
    %c0_i32 = arith.constant 0 : i32
    %c0_i32_0 = arith.constant 0 : i32
    return %arg0, %c0_i32 : i32, i32
  }
}

module attributes {stable_mosaic.version = 11 : i64} {
  func.func @_maxpool_window_kernel(%arg0: i32, %arg1: memref<64x9x128xf32, #tpu.memory_space<vmem>>, %arg2: memref<64x128xf32, #tpu.memory_space<vmem>>) attributes {dimension_semantics = [#tpu.dimension_semantics<parallel>], iteration_bounds = array<i64: 2>, scalar_prefetch = 0 : i64, scratch_operands = 0 : i64, tpu.core_type = #tpu.core_type<tc>, window_params = [{transform_indices = @transform_0, window_bounds = array<i64: 64, 9, 128>}, {transform_indices = @transform_1, window_bounds = array<i64: 64, 128>}]} {
    %c0 = arith.constant 0 : index
    %c0_0 = arith.constant 0 : index
    %c0_1 = arith.constant 0 : index
    %0 = vector.load %arg1[%c0, %c0_0, %c0_1] : memref<64x9x128xf32, #tpu.memory_space<vmem>>, vector<64x9x128xf32>
    %cst = arith.constant dense<0xFF800000> : vector<64x128xf32>
    %1 = vector.multi_reduction <maximumf>, %0, %cst [1] : vector<64x9x128xf32> to vector<64x128xf32>
    %c0_2 = arith.constant 0 : index
    %c0_3 = arith.constant 0 : index
    %2 = vector.load %arg2[%c0_2, %c0_3] : memref<64x128xf32, #tpu.memory_space<vmem>>, vector<64x128xf32>
    tpu.vector_store %arg2[%c0_2, %c0_3], %1 {strides = array<i32>} : memref<64x128xf32, #tpu.memory_space<vmem>>, vector<64x128xf32>,
    return
  }
  func.func @transform_0(%arg0: i32) -> (i32, i32, i32) {
    %c0_i32 = arith.constant 0 : i32
    %c0_i32_0 = arith.constant 0 : i32
    %c0_i32_1 = arith.constant 0 : i32
    return %arg0, %c0_i32, %c0_i32_0 : i32, i32, i32
  }
  func.func @transform_1(%arg0: i32) -> (i32, i32) {
    %c0_i32 = arith.constant 0 : i32
    %c0_i32_0 = arith.constant 0 : i32
    return %arg0, %c0_i32 : i32, i32
  }
}

module attributes {stable_mosaic.version = 11 : i64} {
  func.func @_matmul_bn_kernel(%arg0: i32, %arg1: i32, %arg2: memref<128x128xbf16, #tpu.memory_space<vmem>>, %arg3: memref<128x128xbf16, #tpu.memory_space<vmem>>, %arg4: memref<1x128xf32, #tpu.memory_space<vmem>>, %arg5: memref<1x128xf32, #tpu.memory_space<vmem>>, %arg6: memref<128x128xf32, #tpu.memory_space<vmem>>, %arg7: memref<128x128xf32, #tpu.memory_space<vmem>>) attributes {dimension_semantics = [#tpu.dimension_semantics<parallel>, #tpu.dimension_semantics<arbitrary>], iteration_bounds = array<i64: 1, 1>, scalar_prefetch = 0 : i64, scratch_operands = 1 : i64, tpu.core_type = #tpu.core_type<tc>, window_params = [{transform_indices = @transform_0, window_bounds = array<i64: 128, 128>}, {transform_indices = @transform_1, window_bounds = array<i64: 128, 128>}, {pipeline_mode = #tpu.pipeline_mode<synchronous>, transform_indices = @transform_2, window_bounds = array<i64: 1, 128>}, {pipeline_mode = #tpu.pipeline_mode<synchronous>, transform_indices = @transform_3, window_bounds = array<i64: 1, 128>}, {transform_indices = @transform_4, window_bounds = array<i64: 128, 128>}]} {
    %c0_i32 = arith.constant 0 : i32
    %0 = arith.cmpi eq, %arg1, %c0_i32 : i32
    %1 = arith.extui %0 : i1 to i32
    %c0_i32_0 = arith.constant 0 : i32
    %2 = arith.cmpi ne, %1, %c0_i32_0 : i32
    scf.if %2 {
      %cst_10 = arith.constant 0.000000e+00 : f32
      %12 = vector.broadcast %cst_10 : f32 to vector<128x128xf32>
      %c0_11 = arith.constant 0 : index
      %c0_12 = arith.constant 0 : index
      %13 = vector.load %arg7[%c0_11, %c0_12] : memref<128x128xf32, #tpu.memory_space<vmem>>, vector<128x128xf32>
      tpu.vector_store %arg7[%c0_11, %c0_12], %12 {strides = array<i32>} : memref<128x128xf32, #tpu.memory_space<vmem>>, vector<128x128xf32>,
    } else {
    }
    %c0 = arith.constant 0 : index
    %c0_1 = arith.constant 0 : index
    %3 = vector.load %arg7[%c0, %c0_1] : memref<128x128xf32, #tpu.memory_space<vmem>>, vector<128x128xf32>
    %c0_2 = arith.constant 0 : index
    %c0_3 = arith.constant 0 : index
    %4 = vector.load %arg2[%c0_2, %c0_3] : memref<128x128xbf16, #tpu.memory_space<vmem>>, vector<128x128xbf16>
    %c0_4 = arith.constant 0 : index
    %c0_5 = arith.constant 0 : index
    %5 = vector.load %arg3[%c0_4, %c0_5] : memref<128x128xbf16, #tpu.memory_space<vmem>>, vector<128x128xbf16>
    %cst = arith.constant dense<0.000000e+00> : vector<128x128xf32>
    %6 = tpu.matmul %4, %5, %cst {dimension_numbers = #tpu.dot_dimension_numbers<[1], [0], [0], [1], [0, 0, 1, 1], [], []>} : vector<128x128xbf16>, vector<128x128xbf16>, vector<128x128xf32> -> vector<128x128xf32>
    %7 = arith.addf %3, %6 : vector<128x128xf32>
    %c0_6 = arith.constant 0 : index
    %c0_7 = arith.constant 0 : index
    %8 = vector.load %arg7[%c0_6, %c0_7] : memref<128x128xf32, #tpu.memory_space<vmem>>, vector<128x128xf32>
    tpu.vector_store %arg7[%c0_6, %c0_7], %7 {strides = array<i32>} : memref<128x128xf32, #tpu.memory_space<vmem>>, vector<128x128xf32>,
    %c0_i32_8 = arith.constant 0 : i32
    %9 = arith.cmpi eq, %arg1, %c0_i32_8 : i32
    %10 = arith.extui %9 : i1 to i32
    %c0_i32_9 = arith.constant 0 : i32
    %11 = arith.cmpi ne, %10, %c0_i32_9 : i32
    scf.if %11 {
      %c0_10 = arith.constant 0 : index
      %c0_11 = arith.constant 0 : index
      %12 = vector.load %arg7[%c0_10, %c0_11] : memref<128x128xf32, #tpu.memory_space<vmem>>, vector<128x128xf32>
      %c0_12 = arith.constant 0 : index
      %c0_13 = arith.constant 0 : index
      %13 = vector.load %arg4[%c0_12, %c0_13] : memref<1x128xf32, #tpu.memory_space<vmem>>, vector<1x128xf32>
      %14 = vector.broadcast %13 : vector<1x128xf32> to vector<128x128xf32>
      %15 = arith.mulf %12, %14 : vector<128x128xf32>
      %c0_14 = arith.constant 0 : index
      %c0_15 = arith.constant 0 : index
      %16 = vector.load %arg5[%c0_14, %c0_15] : memref<1x128xf32, #tpu.memory_space<vmem>>, vector<1x128xf32>
      %17 = vector.broadcast %16 : vector<1x128xf32> to vector<128x128xf32>
      %18 = arith.addf %15, %17 : vector<128x128xf32>
      %cst_16 = arith.constant 0.000000e+00 : f32
      %19 = vector.broadcast %cst_16 : f32 to vector<128x128xf32>
      %20 = arith.maximumf %18, %19 : vector<128x128xf32>
      %c0_17 = arith.constant 0 : index
      %c0_18 = arith.constant 0 : index
      %21 = vector.load %arg6[%c0_17, %c0_18] : memref<128x128xf32, #tpu.memory_space<vmem>>, vector<128x128xf32>
      tpu.vector_store %arg6[%c0_17, %c0_18], %20 {strides = array<i32>} : memref<128x128xf32, #tpu.memory_space<vmem>>, vector<128x128xf32>,
    } else {
    }
    return
  }
  func.func @transform_0(%arg0: i32, %arg1: i32) -> (i32, i32) {
    %c0_i32 = arith.constant 0 : i32
    return %arg0, %arg1 : i32, i32
  }
  func.func @transform_1(%arg0: i32, %arg1: i32) -> (i32, i32) {
    %c0_i32 = arith.constant 0 : i32
    %c0_i32_0 = arith.constant 0 : i32
    return %arg1, %c0_i32 : i32, i32
  }
  func.func @transform_2(%arg0: i32, %arg1: i32) -> (i32, i32) {
    %c0_i32 = arith.constant 0 : i32
    %c0_i32_0 = arith.constant 0 : i32
    %c0_i32_1 = arith.constant 0 : i32
    return %c0_i32, %c0_i32_0 : i32, i32
  }
  func.func @transform_3(%arg0: i32, %arg1: i32) -> (i32, i32) {
    %c0_i32 = arith.constant 0 : i32
    %c0_i32_0 = arith.constant 0 : i32
    %c0_i32_1 = arith.constant 0 : i32
    return %c0_i32, %c0_i32_0 : i32, i32
  }
  func.func @transform_4(%arg0: i32, %arg1: i32) -> (i32, i32) {
    %c0_i32 = arith.constant 0 : i32
    %c0_i32_0 = arith.constant 0 : i32
    return %arg0, %c0_i32 : i32, i32
  }
}

module attributes {stable_mosaic.version = 11 : i64} {
  func.func @_matmul_bn_kernel(%arg0: i32, %arg1: i32, %arg2: memref<128x128xbf16, #tpu.memory_space<vmem>>, %arg3: memref<128x128xbf16, #tpu.memory_space<vmem>>, %arg4: memref<1x128xf32, #tpu.memory_space<vmem>>, %arg5: memref<1x128xf32, #tpu.memory_space<vmem>>, %arg6: memref<128x128xf32, #tpu.memory_space<vmem>>, %arg7: memref<128x128xf32, #tpu.memory_space<vmem>>) attributes {dimension_semantics = [#tpu.dimension_semantics<parallel>, #tpu.dimension_semantics<arbitrary>], iteration_bounds = array<i64: 1, 1>, scalar_prefetch = 0 : i64, scratch_operands = 1 : i64, tpu.core_type = #tpu.core_type<tc>, window_params = [{transform_indices = @transform_0, window_bounds = array<i64: 128, 128>}, {transform_indices = @transform_1, window_bounds = array<i64: 128, 128>}, {pipeline_mode = #tpu.pipeline_mode<synchronous>, transform_indices = @transform_2, window_bounds = array<i64: 1, 128>}, {pipeline_mode = #tpu.pipeline_mode<synchronous>, transform_indices = @transform_3, window_bounds = array<i64: 1, 128>}, {transform_indices = @transform_4, window_bounds = array<i64: 128, 128>}]} {
    %c0_i32 = arith.constant 0 : i32
    %0 = arith.cmpi eq, %arg1, %c0_i32 : i32
    %1 = arith.extui %0 : i1 to i32
    %c0_i32_0 = arith.constant 0 : i32
    %2 = arith.cmpi ne, %1, %c0_i32_0 : i32
    scf.if %2 {
      %cst_10 = arith.constant 0.000000e+00 : f32
      %12 = vector.broadcast %cst_10 : f32 to vector<128x128xf32>
      %c0_11 = arith.constant 0 : index
      %c0_12 = arith.constant 0 : index
      %13 = vector.load %arg7[%c0_11, %c0_12] : memref<128x128xf32, #tpu.memory_space<vmem>>, vector<128x128xf32>
      tpu.vector_store %arg7[%c0_11, %c0_12], %12 {strides = array<i32>} : memref<128x128xf32, #tpu.memory_space<vmem>>, vector<128x128xf32>,
    } else {
    }
    %c0 = arith.constant 0 : index
    %c0_1 = arith.constant 0 : index
    %3 = vector.load %arg7[%c0, %c0_1] : memref<128x128xf32, #tpu.memory_space<vmem>>, vector<128x128xf32>
    %c0_2 = arith.constant 0 : index
    %c0_3 = arith.constant 0 : index
    %4 = vector.load %arg2[%c0_2, %c0_3] : memref<128x128xbf16, #tpu.memory_space<vmem>>, vector<128x128xbf16>
    %c0_4 = arith.constant 0 : index
    %c0_5 = arith.constant 0 : index
    %5 = vector.load %arg3[%c0_4, %c0_5] : memref<128x128xbf16, #tpu.memory_space<vmem>>, vector<128x128xbf16>
    %cst = arith.constant dense<0.000000e+00> : vector<128x128xf32>
    %6 = tpu.matmul %4, %5, %cst {dimension_numbers = #tpu.dot_dimension_numbers<[1], [0], [0], [1], [0, 0, 1, 1], [], []>} : vector<128x128xbf16>, vector<128x128xbf16>, vector<128x128xf32> -> vector<128x128xf32>
    %7 = arith.addf %3, %6 : vector<128x128xf32>
    %c0_6 = arith.constant 0 : index
    %c0_7 = arith.constant 0 : index
    %8 = vector.load %arg7[%c0_6, %c0_7] : memref<128x128xf32, #tpu.memory_space<vmem>>, vector<128x128xf32>
    tpu.vector_store %arg7[%c0_6, %c0_7], %7 {strides = array<i32>} : memref<128x128xf32, #tpu.memory_space<vmem>>, vector<128x128xf32>,
    %c0_i32_8 = arith.constant 0 : i32
    %9 = arith.cmpi eq, %arg1, %c0_i32_8 : i32
    %10 = arith.extui %9 : i1 to i32
    %c0_i32_9 = arith.constant 0 : i32
    %11 = arith.cmpi ne, %10, %c0_i32_9 : i32
    scf.if %11 {
      %c0_10 = arith.constant 0 : index
      %c0_11 = arith.constant 0 : index
      %12 = vector.load %arg7[%c0_10, %c0_11] : memref<128x128xf32, #tpu.memory_space<vmem>>, vector<128x128xf32>
      %c0_12 = arith.constant 0 : index
      %c0_13 = arith.constant 0 : index
      %13 = vector.load %arg4[%c0_12, %c0_13] : memref<1x128xf32, #tpu.memory_space<vmem>>, vector<1x128xf32>
      %14 = vector.broadcast %13 : vector<1x128xf32> to vector<128x128xf32>
      %15 = arith.mulf %12, %14 : vector<128x128xf32>
      %c0_14 = arith.constant 0 : index
      %c0_15 = arith.constant 0 : index
      %16 = vector.load %arg5[%c0_14, %c0_15] : memref<1x128xf32, #tpu.memory_space<vmem>>, vector<1x128xf32>
      %17 = vector.broadcast %16 : vector<1x128xf32> to vector<128x128xf32>
      %18 = arith.addf %15, %17 : vector<128x128xf32>
      %c0_16 = arith.constant 0 : index
      %c0_17 = arith.constant 0 : index
      %19 = vector.load %arg6[%c0_16, %c0_17] : memref<128x128xf32, #tpu.memory_space<vmem>>, vector<128x128xf32>
      tpu.vector_store %arg6[%c0_16, %c0_17], %18 {strides = array<i32>} : memref<128x128xf32, #tpu.memory_space<vmem>>, vector<128x128xf32>,
    } else {
    }
    return
  }
  func.func @transform_0(%arg0: i32, %arg1: i32) -> (i32, i32) {
    %c0_i32 = arith.constant 0 : i32
    return %arg0, %arg1 : i32, i32
  }
  func.func @transform_1(%arg0: i32, %arg1: i32) -> (i32, i32) {
    %c0_i32 = arith.constant 0 : i32
    %c0_i32_0 = arith.constant 0 : i32
    return %arg1, %c0_i32 : i32, i32
  }
  func.func @transform_2(%arg0: i32, %arg1: i32) -> (i32, i32) {
    %c0_i32 = arith.constant 0 : i32
    %c0_i32_0 = arith.constant 0 : i32
    %c0_i32_1 = arith.constant 0 : i32
    return %c0_i32, %c0_i32_0 : i32, i32
  }
  func.func @transform_3(%arg0: i32, %arg1: i32) -> (i32, i32) {
    %c0_i32 = arith.constant 0 : i32
    %c0_i32_0 = arith.constant 0 : i32
    %c0_i32_1 = arith.constant 0 : i32
    return %c0_i32, %c0_i32_0 : i32, i32
  }
  func.func @transform_4(%arg0: i32, %arg1: i32) -> (i32, i32) {
    %c0_i32 = arith.constant 0 : i32
    %c0_i32_0 = arith.constant 0 : i32
    return %arg0, %c0_i32 : i32, i32
  }
}

module attributes {stable_mosaic.version = 11 : i64} {
  func.func @_add_relu_gap_kernel(%arg0: i32, %arg1: memref<2x64x128xf32, #tpu.memory_space<vmem>>, %arg2: memref<2x64x128xf32, #tpu.memory_space<vmem>>, %arg3: memref<2x128xf32, #tpu.memory_space<vmem>>, %arg4: memref<2x128xf32, #tpu.memory_space<vmem>>) attributes {dimension_semantics = [#tpu.dimension_semantics<arbitrary>], iteration_bounds = array<i64: 1>, scalar_prefetch = 0 : i64, scratch_operands = 1 : i64, tpu.core_type = #tpu.core_type<tc>, window_params = [{transform_indices = @transform_0, window_bounds = array<i64: 2, 64, 128>}, {transform_indices = @transform_1, window_bounds = array<i64: 2, 64, 128>}, {pipeline_mode = #tpu.pipeline_mode<synchronous>, transform_indices = @transform_2, window_bounds = array<i64: 2, 128>}]} {
    %c0_i32 = arith.constant 0 : i32
    %0 = arith.cmpi eq, %arg0, %c0_i32 : i32
    %1 = arith.extui %0 : i1 to i32
    %c0_i32_0 = arith.constant 0 : i32
    %2 = arith.cmpi ne, %1, %c0_i32_0 : i32
    scf.if %2 {
      %cst_13 = arith.constant 0.000000e+00 : f32
      %15 = vector.broadcast %cst_13 : f32 to vector<2x128xf32>
      %c0_14 = arith.constant 0 : index
      %c0_15 = arith.constant 0 : index
      %16 = vector.load %arg4[%c0_14, %c0_15] : memref<2x128xf32, #tpu.memory_space<vmem>>, vector<2x128xf32>
      tpu.vector_store %arg4[%c0_14, %c0_15], %15 {strides = array<i32>} : memref<2x128xf32, #tpu.memory_space<vmem>>, vector<2x128xf32>,
    } else {
    }
    %c0 = arith.constant 0 : index
    %c0_1 = arith.constant 0 : index
    %c0_2 = arith.constant 0 : index
    %3 = vector.load %arg1[%c0, %c0_1, %c0_2] : memref<2x64x128xf32, #tpu.memory_space<vmem>>, vector<2x64x128xf32>
    %c0_3 = arith.constant 0 : index
    %c0_4 = arith.constant 0 : index
    %c0_5 = arith.constant 0 : index
    %4 = vector.load %arg2[%c0_3, %c0_4, %c0_5] : memref<2x64x128xf32, #tpu.memory_space<vmem>>, vector<2x64x128xf32>
    %5 = arith.addf %3, %4 : vector<2x64x128xf32>
    %cst = arith.constant 0.000000e+00 : f32
    %6 = vector.broadcast %cst : f32 to vector<2x64x128xf32>
    %7 = arith.maximumf %5, %6 : vector<2x64x128xf32>
    %c0_6 = arith.constant 0 : index
    %c0_7 = arith.constant 0 : index
    %8 = vector.load %arg4[%c0_6, %c0_7] : memref<2x128xf32, #tpu.memory_space<vmem>>, vector<2x128xf32>
    %cst_8 = arith.constant dense<0.000000e+00> : vector<2x128xf32>
    %9 = vector.multi_reduction <add>, %7, %cst_8 [1] : vector<2x64x128xf32> to vector<2x128xf32>
    %10 = arith.addf %8, %9 : vector<2x128xf32>
    %c0_9 = arith.constant 0 : index
    %c0_10 = arith.constant 0 : index
    %11 = vector.load %arg4[%c0_9, %c0_10] : memref<2x128xf32, #tpu.memory_space<vmem>>, vector<2x128xf32>
    tpu.vector_store %arg4[%c0_9, %c0_10], %10 {strides = array<i32>} : memref<2x128xf32, #tpu.memory_space<vmem>>, vector<2x128xf32>,
    %c0_i32_11 = arith.constant 0 : i32
    %12 = arith.cmpi eq, %arg0, %c0_i32_11 : i32
    %13 = arith.extui %12 : i1 to i32
    %c0_i32_12 = arith.constant 0 : i32
    %14 = arith.cmpi ne, %13, %c0_i32_12 : i32
    scf.if %14 {
      %c0_13 = arith.constant 0 : index
      %c0_14 = arith.constant 0 : index
      %15 = vector.load %arg4[%c0_13, %c0_14] : memref<2x128xf32, #tpu.memory_space<vmem>>, vector<2x128xf32>
      %cst_15 = arith.constant 1.562500e-02 : f32
      %16 = vector.broadcast %cst_15 : f32 to vector<2x128xf32>
      %17 = arith.mulf %15, %16 : vector<2x128xf32>
      %c0_16 = arith.constant 0 : index
      %c0_17 = arith.constant 0 : index
      %18 = vector.load %arg3[%c0_16, %c0_17] : memref<2x128xf32, #tpu.memory_space<vmem>>, vector<2x128xf32>
      tpu.vector_store %arg3[%c0_16, %c0_17], %17 {strides = array<i32>} : memref<2x128xf32, #tpu.memory_space<vmem>>, vector<2x128xf32>,
    } else {
    }
    return
  }
  func.func @transform_0(%arg0: i32) -> (i32, i32, i32) {
    %c0_i32 = arith.constant 0 : i32
    %c0_i32_0 = arith.constant 0 : i32
    %c0_i32_1 = arith.constant 0 : i32
    return %c0_i32, %arg0, %c0_i32_0 : i32, i32, i32
  }
  func.func @transform_1(%arg0: i32) -> (i32, i32, i32) {
    %c0_i32 = arith.constant 0 : i32
    %c0_i32_0 = arith.constant 0 : i32
    %c0_i32_1 = arith.constant 0 : i32
    return %c0_i32, %arg0, %c0_i32_0 : i32, i32, i32
  }
  func.func @transform_2(%arg0: i32) -> (i32, i32) {
    %c0_i32 = arith.constant 0 : i32
    %c0_i32_0 = arith.constant 0 : i32
    %c0_i32_1 = arith.constant 0 : i32
    return %c0_i32, %c0_i32_0 : i32, i32
  }
}

module attributes {stable_mosaic.version = 11 : i64} {
  func.func @_matmul_bn_kernel(%arg0: i32, %arg1: i32, %arg2: memref<8x128xbf16, #tpu.memory_space<vmem>>, %arg3: memref<128x128xbf16, #tpu.memory_space<vmem>>, %arg4: memref<1x128xf32, #tpu.memory_space<vmem>>, %arg5: memref<1x128xf32, #tpu.memory_space<vmem>>, %arg6: memref<8x128xf32, #tpu.memory_space<vmem>>, %arg7: memref<8x128xf32, #tpu.memory_space<vmem>>) attributes {dimension_semantics = [#tpu.dimension_semantics<parallel>, #tpu.dimension_semantics<arbitrary>], iteration_bounds = array<i64: 1, 1>, scalar_prefetch = 0 : i64, scratch_operands = 1 : i64, tpu.core_type = #tpu.core_type<tc>, window_params = [{transform_indices = @transform_0, window_bounds = array<i64: 8, 128>}, {transform_indices = @transform_1, window_bounds = array<i64: 128, 128>}, {pipeline_mode = #tpu.pipeline_mode<synchronous>, transform_indices = @transform_2, window_bounds = array<i64: 1, 128>}, {pipeline_mode = #tpu.pipeline_mode<synchronous>, transform_indices = @transform_3, window_bounds = array<i64: 1, 128>}, {transform_indices = @transform_4, window_bounds = array<i64: 8, 128>}]} {
    %c0_i32 = arith.constant 0 : i32
    %0 = arith.cmpi eq, %arg1, %c0_i32 : i32
    %1 = arith.extui %0 : i1 to i32
    %c0_i32_0 = arith.constant 0 : i32
    %2 = arith.cmpi ne, %1, %c0_i32_0 : i32
    scf.if %2 {
      %cst_10 = arith.constant 0.000000e+00 : f32
      %12 = vector.broadcast %cst_10 : f32 to vector<8x128xf32>
      %c0_11 = arith.constant 0 : index
      %c0_12 = arith.constant 0 : index
      %13 = vector.load %arg7[%c0_11, %c0_12] : memref<8x128xf32, #tpu.memory_space<vmem>>, vector<8x128xf32>
      tpu.vector_store %arg7[%c0_11, %c0_12], %12 {strides = array<i32>} : memref<8x128xf32, #tpu.memory_space<vmem>>, vector<8x128xf32>,
    } else {
    }
    %c0 = arith.constant 0 : index
    %c0_1 = arith.constant 0 : index
    %3 = vector.load %arg7[%c0, %c0_1] : memref<8x128xf32, #tpu.memory_space<vmem>>, vector<8x128xf32>
    %c0_2 = arith.constant 0 : index
    %c0_3 = arith.constant 0 : index
    %4 = vector.load %arg2[%c0_2, %c0_3] : memref<8x128xbf16, #tpu.memory_space<vmem>>, vector<8x128xbf16>
    %c0_4 = arith.constant 0 : index
    %c0_5 = arith.constant 0 : index
    %5 = vector.load %arg3[%c0_4, %c0_5] : memref<128x128xbf16, #tpu.memory_space<vmem>>, vector<128x128xbf16>
    %cst = arith.constant dense<0.000000e+00> : vector<8x128xf32>
    %6 = tpu.matmul %4, %5, %cst {dimension_numbers = #tpu.dot_dimension_numbers<[1], [0], [0], [1], [0, 0, 1, 1], [], []>} : vector<8x128xbf16>, vector<128x128xbf16>, vector<8x128xf32> -> vector<8x128xf32>
    %7 = arith.addf %3, %6 : vector<8x128xf32>
    %c0_6 = arith.constant 0 : index
    %c0_7 = arith.constant 0 : index
    %8 = vector.load %arg7[%c0_6, %c0_7] : memref<8x128xf32, #tpu.memory_space<vmem>>, vector<8x128xf32>
    tpu.vector_store %arg7[%c0_6, %c0_7], %7 {strides = array<i32>} : memref<8x128xf32, #tpu.memory_space<vmem>>, vector<8x128xf32>,
    %c0_i32_8 = arith.constant 0 : i32
    %9 = arith.cmpi eq, %arg1, %c0_i32_8 : i32
    %10 = arith.extui %9 : i1 to i32
    %c0_i32_9 = arith.constant 0 : i32
    %11 = arith.cmpi ne, %10, %c0_i32_9 : i32
    scf.if %11 {
      %c0_10 = arith.constant 0 : index
      %c0_11 = arith.constant 0 : index
      %12 = vector.load %arg7[%c0_10, %c0_11] : memref<8x128xf32, #tpu.memory_space<vmem>>, vector<8x128xf32>
      %c0_12 = arith.constant 0 : index
      %c0_13 = arith.constant 0 : index
      %13 = vector.load %arg4[%c0_12, %c0_13] : memref<1x128xf32, #tpu.memory_space<vmem>>, vector<1x128xf32>
      %14 = vector.broadcast %13 : vector<1x128xf32> to vector<8x128xf32>
      %15 = arith.mulf %12, %14 : vector<8x128xf32>
      %c0_14 = arith.constant 0 : index
      %c0_15 = arith.constant 0 : index
      %16 = vector.load %arg5[%c0_14, %c0_15] : memref<1x128xf32, #tpu.memory_space<vmem>>, vector<1x128xf32>
      %17 = vector.broadcast %16 : vector<1x128xf32> to vector<8x128xf32>
      %18 = arith.addf %15, %17 : vector<8x128xf32>
      %c0_16 = arith.constant 0 : index
      %c0_17 = arith.constant 0 : index
      %19 = vector.load %arg6[%c0_16, %c0_17] : memref<8x128xf32, #tpu.memory_space<vmem>>, vector<8x128xf32>
      tpu.vector_store %arg6[%c0_16, %c0_17], %18 {strides = array<i32>} : memref<8x128xf32, #tpu.memory_space<vmem>>, vector<8x128xf32>,
    } else {
    }
    return
  }
  func.func @transform_0(%arg0: i32, %arg1: i32) -> (i32, i32) {
    %c0_i32 = arith.constant 0 : i32
    return %arg0, %arg1 : i32, i32
  }
  func.func @transform_1(%arg0: i32, %arg1: i32) -> (i32, i32) {
    %c0_i32 = arith.constant 0 : i32
    %c0_i32_0 = arith.constant 0 : i32
    return %arg1, %c0_i32 : i32, i32
  }
  func.func @transform_2(%arg0: i32, %arg1: i32) -> (i32, i32) {
    %c0_i32 = arith.constant 0 : i32
    %c0_i32_0 = arith.constant 0 : i32
    %c0_i32_1 = arith.constant 0 : i32
    return %c0_i32, %c0_i32_0 : i32, i32
  }
  func.func @transform_3(%arg0: i32, %arg1: i32) -> (i32, i32) {
    %c0_i32 = arith.constant 0 : i32
    %c0_i32_0 = arith.constant 0 : i32
    %c0_i32_1 = arith.constant 0 : i32
    return %c0_i32, %c0_i32_0 : i32, i32
  }
  func.func @transform_4(%arg0: i32, %arg1: i32) -> (i32, i32) {
    %c0_i32 = arith.constant 0 : i32
    %c0_i32_0 = arith.constant 0 : i32
    return %arg0, %c0_i32 : i32, i32
  }
}

</mosaic_0001>

<bundles_post_ra>
// kernel: encoder_cnn_forward.8
= control target key start
LH: loop header
LB: loop body
LE: loop exit
PB: predicated region body
PF: predicated region fallthrough
CT: control target
= control target key end

     0   :  { %s1486_s15 = smov 0   ;;  %s1488_s16 = smov 0   ;;  %s1751_s0 = inlined_call_operand.vmem [shape: bf16[512,256], index: 0, kind: input, shape index: {}]   ;;  %s1752_s1 = inlined_call_operand.vmem [shape: bf16[256,128], index: 1, kind: input, shape index: {}]   ;;  %s1753_s2 = inlined_call_operand.vmem [shape: f32[1,128], index: 2, kind: input, shape index: {}]   ;;  %s1754_s3 = inlined_call_operand.vmem [shape: f32[1,128], index: 3, kind: input, shape index: {}]   ;;  %s1755_s4 = inlined_call_operand.vmem [shape: f32[512,128], index: 4, kind: output, shape index: {}]  }
   0x1   :  { %s1490_s17 = smov 0  }
   0x2 LB: > { %s26_s18 = sadd.s32 1, %s1455_s16  ;;  %p1146_p0 = scmp.ge.s32.totalorder %s1459_s17, 1  ;;  %s1459_s17 = sphi %s1490_s17, %s14_s17   ;;  %s1455_s16 = sphi %s1488_s16, %s1757_s16   ;;  %s1451_s15 = sphi %s1486_s15, %s1756_s15  }
   0x3   : > { %p28_p1 = scmp.ge.s32.totalorder %s26_s18, 2  ;;  %p194_p2 = scmp.lt.s32.totalorder %s1459_s17, 3 }
   0x5   : > { %s1759_s18 = smov (%p28_p1, %s26_s18), 0  ;;  %p195_p3 = pnand %p1146_p0, %p194_p2 }
   0x6   : > { %s1147_s5 = sshll.u32 (!%p195_p3), %s1451_s15, 5 }
   0x7   : > { %198 = sbr.rel (%p195_p3) target bundleno = 306 (0x132), region = 36  ;;  %p232_p4 = scmp.lt.s32.totalorder (!%p195_p3), %s1147_s5, 63 }
   0xc   : > { %v1386_v0 = vld [vmem:[%s1752_s1 + $0x38] sm:$0xff]  ;;  %v1385_v2 = vld [vmem:[%s1752_s1 + $0x30] sm:$0xff]  ;;  %v1384_v4 = vld [vmem:[%s1752_s1 + $0x28] sm:$0xff]  ;;  %s1761_s5 = smov (!%p232_p4, %s1147_s5), 63 }
   0xd   : > { %v1394_v1 = vld [vmem:[%s1752_s1 + $0x78] sm:$0xff]  ;;  %642 = vmatpush.bf16.msra.mxu0 %v1386_v0  ;;  %1395 = vmatpush.bf16.msra.mxu2 %v1386_v0  ;;  %v1393_v3 = vld [vmem:[%s1752_s1 + $0x70] sm:$0xff]  ;;  %v1392_v5 = vld [vmem:[%s1752_s1 + $0x68] sm:$0xff]  ;;  %s1346_s21 = sshll.u32 %s1761_s5, 3 }
   0xe   : > { %731 = vmatpush.bf16.msra.mxu1 %v1394_v1  ;;  %1403 = vmatpush.bf16.msra.mxu3 %v1394_v1  ;;  %v1383_v6 = vld [vmem:[%s1752_s1 + $0x20] sm:$0xff]  ;;  %v1382_v8 = vld [vmem:[%s1752_s1 + $0x18] sm:$0xff]  ;;  %v1381_v10 = vld [vmem:[%s1752_s1 + $0x10] sm:$0xff]  ;;  %s1554_s26 = scalar_lea.vmem %s1751_s0, %s1346_s21  ;;  %s1646_s14 = scalar_lea.vmem %s1755_s4, %s1346_s21 }
   0xf   : > { %v1391_v7 = vld [vmem:[%s1752_s1 + $0x60] sm:$0xff]  ;;  %v1390_v9 = vld [vmem:[%s1752_s1 + $0x58] sm:$0xff]  ;;  %v1389_v11 = vld [vmem:[%s1752_s1 + $0x50] sm:$0xff] }
  0x10   : > { %v1380_v12 = vld [vmem:[%s1752_s1 + $0x8] sm:$0xff]  ;;  %v1379_v14 = vld [vmem:[%s1752_s1] sm:$0xff]  ;;  %v1162_v28 = vld [vmem:[%s1554_s26 + $0x10] sm:$0xf] }
  0x11   : > { %643 = vmatpush.bf16.msra.mxu0 %v1385_v2  ;;  %1396 = vmatpush.bf16.msra.mxu2 %v1385_v2  ;;  %v1388_v13 = vld [vmem:[%s1752_s1 + $0x48] sm:$0xff]  ;;  %v1387_v15 = vld [vmem:[%s1752_s1 + $0x40] sm:$0xff]  ;;  %v1350_v29 = vld [vmem:[%s1554_s26 + $0x14] sm:$0xf0] }
  0x12   : > { %732 = vmatpush.bf16.msra.mxu1 %v1393_v3  ;;  %1404 = vmatpush.bf16.msra.mxu3 %v1393_v3  ;;  %v1154_v16 = vld [vmem:[%s1554_s26] sm:$0xf]  ;;  %v1348_v17 = vld [vmem:[%s1554_s26 + $0x4] sm:$0xf0]  ;;  %v1347_v20 = vld [vmem:[%s1554_s26 + $0x4] sm:$0xf]  ;;  %v1163_v36 = vor.u32 %v1350_v29, %v1162_v28 }
  0x13   : > { %v1218_v18 = vld [vmem:[%s1554_s26 + $0x80] sm:$0xf]  ;;  %v1364_v19 = vld [vmem:[%s1554_s26 + $0x84] sm:$0xf0]  ;;  %v1156_v21 = vld [vmem:[%s1554_s26 + $0x8] sm:$0xf0]  ;;  %v1155_v24 = vor.u32 %v1348_v17, %v1154_v16 }
  0x14   : > { %v1363_v22 = vld [vmem:[%s1554_s26 + $0x84] sm:$0xf]  ;;  %v1220_v23 = vld [vmem:[%s1554_s26 + $0x88] sm:$0xf0]  ;;  %v1219_v25 = vor.u32 %v1364_v19, %v1218_v18  ;;  %v1159_v26 = vor.u32 %v1347_v20, %v1156_v21  ;;  %v1226_v30 = vld [vmem:[%s1554_s26 + $0x90] sm:$0xf] }
  0x15   : > { %644 = vmatpush.bf16.msra.mxu0 %v1384_v4  ;;  %1397 = vmatpush.bf16.msra.mxu2 %v1384_v4  ;;  %v1223_v27 = vor.u32 %v1363_v22, %v1220_v23  ;;  %v1366_v31 = vld [vmem:[%s1554_s26 + $0x94] sm:$0xf0]  ;;  %v1349_v32 = vld [vmem:[%s1554_s26 + $0x14] sm:$0xf]  ;;  %v1164_v33 = vld [vmem:[%s1554_s26 + $0x18] sm:$0xf0] }
  0x16   : > { %733 = vmatpush.bf16.msra.mxu1 %v1392_v5  ;;  %1405 = vmatpush.bf16.msra.mxu3 %v1392_v5  ;;  %v1365_v34 = vld [vmem:[%s1554_s26 + $0x94] sm:$0xf]  ;;  %v1228_v35 = vld [vmem:[%s1554_s26 + $0x98] sm:$0xf0]  ;;  %v1227_v37 = vor.u32 %v1366_v31, %v1226_v30  ;;  %v1167_v38 = vor.u32 %v1349_v32, %v1164_v33  ;;  %v1170_v40 = vld [vmem:[%s1554_s26 + $0x20] sm:$0xf] }
  0x17   : > { %v1231_v39 = vor.u32 %v1365_v34, %v1228_v35  ;;  %v1352_v41 = vld [vmem:[%s1554_s26 + $0x24] sm:$0xf0]  ;;  %v1234_v42 = vld [vmem:[%s1554_s26 + $0xa0] sm:$0xf]  ;;  %v1351_v44 = vld [vmem:[%s1554_s26 + $0x24] sm:$0xf] }
  0x18   : > { %v1368_v43 = vld [vmem:[%s1554_s26 + $0xa4] sm:$0xf0]  ;;  %v1172_v45 = vld [vmem:[%s1554_s26 + $0x28] sm:$0xf0]  ;;  %v1367_v46 = vld [vmem:[%s1554_s26 + $0xa4] sm:$0xf]  ;;  %v1171_v48 = vor.u32 %v1352_v41, %v1170_v40 }
  0x19   : > { %645 = vmatpush.bf16.msra.mxu0 %v1383_v6  ;;  %1398 = vmatpush.bf16.msra.mxu2 %v1383_v6  ;;  %v1236_v47 = vld [vmem:[%s1554_s26 + $0xa8] sm:$0xf0]  ;;  %v1235_v49 = vor.u32 %v1368_v43, %v1234_v42  ;;  %v1175_v50 = vor.u32 %v1351_v44, %v1172_v45  ;;  %v1178_v52 = vld [vmem:[%s1554_s26 + $0x30] sm:$0xf]  ;;  %v1354_v53 = vld [vmem:[%s1554_s26 + $0x34] sm:$0xf0] }
  0x1a   : > { %734 = vmatpush.bf16.msra.mxu1 %v1391_v7  ;;  %1406 = vmatpush.bf16.msra.mxu3 %v1391_v7  ;;  %v1239_v51 = vor.u32 %v1367_v46, %v1236_v47  ;;  %v1242_v54 = vld [vmem:[%s1554_s26 + $0xb0] sm:$0xf]  ;;  %v1370_v55 = vld [vmem:[%s1554_s26 + $0xb4] sm:$0xf0]  ;;  %v1353_v56 = vld [vmem:[%s1554_s26 + $0x34] sm:$0xf]  ;;  %v1179_v60 = vor.u32 %v1354_v53, %v1178_v52 }
  0x1b   : > { %v1180_v57 = vld [vmem:[%s1554_s26 + $0x38] sm:$0xf0]  ;;  %v1369_v58 = vld [vmem:[%s1554_s26 + $0xb4] sm:$0xf]  ;;  %v1243_v61 = vor.u32 %v1370_v55, %v1242_v54  ;;  %v1186_v0 = vld [vmem:[%s1554_s26 + $0x40] sm:$0xf] }
  0x1c   : > { %v1244_v59 = vld [vmem:[%s1554_s26 + $0xb8] sm:$0xf0]  ;;  %v1183_v62 = vor.u32 %v1353_v56, %v1180_v57  ;;  %v1356_v1 = vld [vmem:[%s1554_s26 + $0x44] sm:$0xf0]  ;;  %v1250_v2 = vld [vmem:[%s1554_s26 + $0xc0] sm:$0xf] }
  0x1d   : > { %646 = vmatpush.bf16.msra.mxu0 %v1382_v8  ;;  %1399 = vmatpush.bf16.msra.mxu2 %v1382_v8  ;;  %v1247_v63 = vor.u32 %v1369_v58, %v1244_v59  ;;  %v1372_v3 = vld [vmem:[%s1554_s26 + $0xc4] sm:$0xf0]  ;;  %v1355_v4 = vld [vmem:[%s1554_s26 + $0x44] sm:$0xf]  ;;  %v1188_v5 = vld [vmem:[%s1554_s26 + $0x48] sm:$0xf0]  ;;  %v1187_v8 = vor.u32 %v1356_v1, %v1186_v0 }
  0x1e   : > { %735 = vmatpush.bf16.msra.mxu1 %v1390_v9  ;;  %1407 = vmatpush.bf16.msra.mxu3 %v1390_v9  ;;  %v1371_v6 = vld [vmem:[%s1554_s26 + $0xc4] sm:$0xf]  ;;  %v1252_v7 = vld [vmem:[%s1554_s26 + $0xc8] sm:$0xf0]  ;;  %v1251_v9 = vor.u32 %v1372_v3, %v1250_v2  ;;  %v1357_v16 = vld [vmem:[%s1554_s26 + $0x54] sm:$0xf] }
  0x1f   : > { %v1196_v17 = vld [vmem:[%s1554_s26 + $0x58] sm:$0xf0]  ;;  %v1373_v18 = vld [vmem:[%s1554_s26 + $0xd4] sm:$0xf]  ;;  %v1359_v28 = vld [vmem:[%s1554_s26 + $0x64] sm:$0xf] }
  0x20   : > { %v1260_v19 = vld [vmem:[%s1554_s26 + $0xd8] sm:$0xf0]  ;;  %v1199_v22 = vor.u32 %v1357_v16, %v1196_v17  ;;  %v1204_v29 = vld [vmem:[%s1554_s26 + $0x68] sm:$0xf0]  ;;  %v1375_v30 = vld [vmem:[%s1554_s26 + $0xe4] sm:$0xf] }
  0x21   : > { %647 = vmatpush.bf16.msra.mxu0 %v1381_v10  ;;  %1400 = vmatpush.bf16.msra.mxu2 %v1381_v10  ;;  %v1191_v10 = vor.u32 %v1355_v4, %v1188_v5  ;;  %v1263_v23 = vor.u32 %v1373_v18, %v1260_v19  ;;  %v1268_v31 = vld [vmem:[%s1554_s26 + $0xe8] sm:$0xf0]  ;;  %v1207_v34 = vor.u32 %v1359_v28, %v1204_v29  ;;  %v1361_v40 = vld [vmem:[%s1554_s26 + $0x74] sm:$0xf]  ;;  %v1212_v41 = vld [vmem:[%s1554_s26 + $0x78] sm:$0xf0] }
  0x22   : > { %736 = vmatpush.bf16.msra.mxu1 %v1389_v11  ;;  %1408 = vmatpush.bf16.msra.mxu3 %v1389_v11  ;;  %v1255_v11 = vor.u32 %v1371_v6, %v1252_v7  ;;  %v1271_v35 = vor.u32 %v1375_v30, %v1268_v31  ;;  %v1377_v42 = vld [vmem:[%s1554_s26 + $0xf4] sm:$0xf]  ;;  %v1276_v43 = vld [vmem:[%s1554_s26 + $0xf8] sm:$0xf0]  ;;  %v1215_v46 = vor.u32 %v1361_v40, %v1212_v41  ;;  %v1637_v52 = vld [vmem:[%s1754_s3] ss:$0 sm:$0xff] }
  0x23   : > { %v1279_v47 = vor.u32 %v1377_v42, %v1276_v43 }
  0x25   : > { %648 = vmatpush.bf16.msra.mxu0 %v1380_v12  ;;  %1401 = vmatpush.bf16.msra.mxu2 %v1380_v12  ;;  %v1194_v12 = vld [vmem:[%s1554_s26 + $0x50] sm:$0xf] }
  0x26   : > { %737 = vmatpush.bf16.msra.mxu1 %v1388_v13  ;;  %1409 = vmatpush.bf16.msra.mxu3 %v1388_v13  ;;  %v1358_v13 = vld [vmem:[%s1554_s26 + $0x54] sm:$0xf0] }
  0x27   : > { %v1195_v20 = vor.u32 %v1358_v13, %v1194_v12 }
  0x29   : > { %649 = vmatpush.bf16.msra.mxu0 %v1379_v14  ;;  %1402 = vmatpush.bf16.msra.mxu2 %v1379_v14  ;;  %v1258_v14 = vld [vmem:[%s1554_s26 + $0xd0] sm:$0xf] }
  0x2a   : > { %738 = vmatpush.bf16.msra.mxu1 %v1387_v15  ;;  %1410 = vmatpush.bf16.msra.mxu3 %v1387_v15  ;;  %v1374_v15 = vld [vmem:[%s1554_s26 + $0xd4] sm:$0xf0] }
  0x2b   : > { %v1259_v21 = vor.u32 %v1374_v15, %v1258_v14 }
  0x2c   : > { %650 = vmatmul.bf16.vlgmr.msra.gmra.mxu0 %v1155_v24  ;;  %690 = vmatmul.bf16.vlgmr.msra.gmra.mxu2 %v1219_v25  ;;  %v1202_v24 = vld [vmem:[%s1554_s26 + $0x60] sm:$0xf]  ;;  %v1360_v25 = vld [vmem:[%s1554_s26 + $0x64] sm:$0xf0] }
  0x2d   : > { %739 = vmatmul.bf16.vlgmr.msra.gmra.mxu1 %v1159_v26  ;;  %779 = vmatmul.bf16.vlgmr.msra.gmra.mxu3 %v1223_v27  ;;  %v1266_v26 = vld [vmem:[%s1554_s26 + $0xe0] sm:$0xf]  ;;  %v1376_v27 = vld [vmem:[%s1554_s26 + $0xe4] sm:$0xf0]  ;;  %v1203_v32 = vor.u32 %v1360_v25, %v1202_v24 }
  0x2e   : > { %v1267_v33 = vor.u32 %v1376_v27, %v1266_v26 }
  0x3c   : > { %655 = vmatmul.bf16.gmra.mxu0 %v1163_v36  ;;  %695 = vmatmul.bf16.gmra.mxu2 %v1227_v37  ;;  %v1210_v36 = vld [vmem:[%s1554_s26 + $0x70] sm:$0xf]  ;;  %v1362_v37 = vld [vmem:[%s1554_s26 + $0x74] sm:$0xf0] }
  0x3d   : > { %744 = vmatmul.bf16.gmra.mxu1 %v1167_v38  ;;  %784 = vmatmul.bf16.gmra.mxu3 %v1231_v39  ;;  %v1274_v38 = vld [vmem:[%s1554_s26 + $0xf0] sm:$0xf]  ;;  %v1378_v39 = vld [vmem:[%s1554_s26 + $0xf4] sm:$0xf0]  ;;  %v1211_v44 = vor.u32 %v1362_v37, %v1210_v36 }
  0x3e   : > { %v1275_v45 = vor.u32 %v1378_v39, %v1274_v38 }
  0x4c   : > { %660 = vmatmul.bf16.gmra.mxu0 %v1171_v48  ;;  %700 = vmatmul.bf16.gmra.mxu2 %v1235_v49  ;;  %v1632_v49 = vld [vmem:[%s1753_s2] ss:$0 sm:$0xff] }
  0x4d   : > { %749 = vmatmul.bf16.gmra.mxu1 %v1175_v50  ;;  %789 = vmatmul.bf16.gmra.mxu3 %v1239_v51 }
  0x5c   : > { %665 = vmatmul.bf16.gmra.mxu0 %v1179_v60  ;;  %705 = vmatmul.bf16.gmra.mxu2 %v1243_v61 }
  0x5d   : > { %754 = vmatmul.bf16.gmra.mxu1 %v1183_v62  ;;  %794 = vmatmul.bf16.gmra.mxu3 %v1247_v63 }
  0x6c   : > { %670 = vmatmul.bf16.gmra.mxu0 %v1187_v8  ;;  %710 = vmatmul.bf16.gmra.mxu2 %v1251_v9 }
  0x6d   : > { %759 = vmatmul.bf16.gmra.mxu1 %v1191_v10  ;;  %799 = vmatmul.bf16.gmra.mxu3 %v1255_v11 }
  0x7c   : > { %675 = vmatmul.bf16.gmra.mxu0 %v1195_v20  ;;  %715 = vmatmul.bf16.gmra.mxu2 %v1259_v21 }
  0x7d   : > { %764 = vmatmul.bf16.gmra.mxu1 %v1199_v22  ;;  %804 = vmatmul.bf16.gmra.mxu3 %v1263_v23 }
  0x8c   : > { %680 = vmatmul.bf16.gmra.mxu0 %v1203_v32  ;;  %720 = vmatmul.bf16.gmra.mxu2 %v1267_v33 }
  0x8d   : > { %769 = vmatmul.bf16.gmra.mxu1 %v1207_v34  ;;  %809 = vmatmul.bf16.gmra.mxu3 %v1271_v35 }
  0x9c   : > { %685 = vmatmul.bf16.gmra.mxu0 %v1211_v44  ;;  %725 = vmatmul.bf16.gmra.mxu2 %v1275_v45 }
  0x9d   : > { %774 = vmatmul.bf16.gmra.mxu1 %v1215_v46  ;;  %814 = vmatmul.bf16.gmra.mxu3 %v1279_v47 }
  0xa9   : > { %v651_v48 = vpop.f32.mrf.mxu0 }
  0xaa   : > { %v740_v50 = vpop.f32.mrf.mxu1 }
  0xab   : > { %v741_v51 = vadd.f32 %v740_v50, %v651_v48 }
  0xad   : > { %v923_v53 = vmul.f32 %v1632_v49, %v741_v51 }
  0xaf   : > { %v959_v54 = vadd.f32 %v1637_v52, %v923_v53  ;;  %v691_v55 = vpop.f32.mrf.mxu2 }
  0xb0   : > { %v780_v56 = vpop.f32.mrf.mxu3 }
  0xb1   : > { %v991_v57 = vmax.f32 %v959_v54, 0.0  ;;  %v781_v58 = vadd.f32 %v780_v56, %v691_v55  ;;  %v653_v59 = vpop.f32.mrf.mxu0 }
  0xb2   : > { %v742_v60 = vpop.f32.mrf.mxu1 }
  0xb3   : > { %1023 = vst [vmem:[%s1646_s14] sm:$0xff] %v991_v57  ;;  %v939_v61 = vmul.f32 %v1632_v49, %v781_v58  ;;  %v743_v62 = vadd.f32 %v742_v60, %v653_v59 }
  0xb5   : > { %v975_v63 = vadd.f32 %v1637_v52, %v939_v61  ;;  %v924_v0 = vmul.f32 %v1632_v49, %v743_v62 }
  0xb7   : > { %v1007_v1 = vmax.f32 %v975_v63, 0.0  ;;  %v960_v2 = vadd.f32 %v1637_v52, %v924_v0  ;;  %v693_v3 = vpop.f32.mrf.mxu2 }
  0xb8   : > { %v782_v4 = vpop.f32.mrf.mxu3 }
  0xb9   : > { %1039 = vst [vmem:[%s1646_s14 + $0x80] sm:$0xff] %v1007_v1  ;;  %v992_v5 = vmax.f32 %v960_v2, 0.0  ;;  %v783_v6 = vadd.f32 %v782_v4, %v693_v3  ;;  %v656_v7 = vpop.f32.mrf.mxu0 }
  0xba   : > { %v745_v8 = vpop.f32.mrf.mxu1 }
  0xbb   : > { %1024 = vst [vmem:[%s1646_s14 + $0x8] sm:$0xff] %v992_v5  ;;  %v940_v9 = vmul.f32 %v1632_v49, %v783_v6  ;;  %v746_v10 = vadd.f32 %v745_v8, %v656_v7 }
  0xbd   : > { %v976_v11 = vadd.f32 %v1637_v52, %v940_v9  ;;  %v925_v12 = vmul.f32 %v1632_v49, %v746_v10 }
  0xbf   : > { %v1008_v13 = vmax.f32 %v976_v11, 0.0  ;;  %v961_v14 = vadd.f32 %v1637_v52, %v925_v12  ;;  %v696_v15 = vpop.f32.mrf.mxu2 }
  0xc0   : > { %v785_v16 = vpop.f32.mrf.mxu3 }
  0xc1   : > { %1040 = vst [vmem:[%s1646_s14 + $0x88] sm:$0xff] %v1008_v13  ;;  %v993_v17 = vmax.f32 %v961_v14, 0.0  ;;  %v786_v18 = vadd.f32 %v785_v16, %v696_v15  ;;  %v658_v19 = vpop.f32.mrf.mxu0 }
  0xc2   : > { %v747_v20 = vpop.f32.mrf.mxu1 }
  0xc3   : > { %1025 = vst [vmem:[%s1646_s14 + $0x10] sm:$0xff] %v993_v17  ;;  %v941_v21 = vmul.f32 %v1632_v49, %v786_v18  ;;  %v748_v22 = vadd.f32 %v747_v20, %v658_v19 }
  0xc5   : > { %v977_v23 = vadd.f32 %v1637_v52, %v941_v21  ;;  %v926_v24 = vmul.f32 %v1632_v49, %v748_v22 }
  0xc7   : > { %v1009_v25 = vmax.f32 %v977_v23, 0.0  ;;  %v962_v26 = vadd.f32 %v1637_v52, %v926_v24  ;;  %v698_v27 = vpop.f32.mrf.mxu2 }
  0xc8   : > { %v787_v28 = vpop.f32.mrf.mxu3 }
  0xc9   : > { %1041 = vst [vmem:[%s1646_s14 + $0x90] sm:$0xff] %v1009_v25  ;;  %v994_v29 = vmax.f32 %v962_v26, 0.0  ;;  %v788_v30 = vadd.f32 %v787_v28, %v698_v27  ;;  %v661_v31 = vpop.f32.mrf.mxu0 }
  0xca   : > { %v750_v32 = vpop.f32.mrf.mxu1 }
  0xcb   : > { %1026 = vst [vmem:[%s1646_s14 + $0x18] sm:$0xff] %v994_v29  ;;  %v942_v33 = vmul.f32 %v1632_v49, %v788_v30  ;;  %v751_v34 = vadd.f32 %v750_v32, %v661_v31 }
  0xcd   : > { %v978_v35 = vadd.f32 %v1637_v52, %v942_v33  ;;  %v927_v36 = vmul.f32 %v1632_v49, %v751_v34 }
  0xcf   : > { %v1010_v37 = vmax.f32 %v978_v35, 0.0  ;;  %v963_v38 = vadd.f32 %v1637_v52, %v927_v36  ;;  %v701_v39 = vpop.f32.mrf.mxu2 }
  0xd0   : > { %v790_v40 = vpop.f32.mrf.mxu3 }
  0xd1   : > { %1042 = vst [vmem:[%s1646_s14 + $0x98] sm:$0xff] %v1010_v37  ;;  %v995_v41 = vmax.f32 %v963_v38, 0.0  ;;  %v791_v42 = vadd.f32 %v790_v40, %v701_v39  ;;  %v663_v43 = vpop.f32.mrf.mxu0 }
  0xd2   : > { %v752_v44 = vpop.f32.mrf.mxu1 }
  0xd3   : > { %1027 = vst [vmem:[%s1646_s14 + $0x20] sm:$0xff] %v995_v41  ;;  %v943_v45 = vmul.f32 %v1632_v49, %v791_v42  ;;  %v753_v46 = vadd.f32 %v752_v44, %v663_v43 }
  0xd5   : > { %v979_v47 = vadd.f32 %v1637_v52, %v943_v45  ;;  %v928_v48 = vmul.f32 %v1632_v49, %v753_v46 }
  0xd7   : > { %v1011_v50 = vmax.f32 %v979_v47, 0.0  ;;  %v964_v51 = vadd.f32 %v1637_v52, %v928_v48  ;;  %v703_v53 = vpop.f32.mrf.mxu2 }
  0xd8   : > { %v792_v54 = vpop.f32.mrf.mxu3 }
  0xd9   : > { %1043 = vst [vmem:[%s1646_s14 + $0xa0] sm:$0xff] %v1011_v50  ;;  %v996_v55 = vmax.f32 %v964_v51, 0.0  ;;  %v793_v56 = vadd.f32 %v792_v54, %v703_v53  ;;  %v666_v57 = vpop.f32.mrf.mxu0 }
  0xda   : > { %v755_v58 = vpop.f32.mrf.mxu1 }
  0xdb   : > { %1028 = vst [vmem:[%s1646_s14 + $0x28] sm:$0xff] %v996_v55  ;;  %v944_v59 = vmul.f32 %v1632_v49, %v793_v56  ;;  %v756_v60 = vadd.f32 %v755_v58, %v666_v57 }
  0xdd   : > { %v980_v61 = vadd.f32 %v1637_v52, %v944_v59  ;;  %v929_v62 = vmul.f32 %v1632_v49, %v756_v60 }
  0xdf   : > { %v1012_v63 = vmax.f32 %v980_v61, 0.0  ;;  %v965_v0 = vadd.f32 %v1637_v52, %v929_v62  ;;  %v706_v1 = vpop.f32.mrf.mxu2 }
  0xe0   : > { %v795_v2 = vpop.f32.mrf.mxu3 }
  0xe1   : > { %1044 = vst [vmem:[%s1646_s14 + $0xa8] sm:$0xff] %v1012_v63  ;;  %v997_v3 = vmax.f32 %v965_v0, 0.0  ;;  %v796_v4 = vadd.f32 %v795_v2, %v706_v1  ;;  %v668_v5 = vpop.f32.mrf.mxu0 }
  0xe2   : > { %v757_v6 = vpop.f32.mrf.mxu1 }
  0xe3   : > { %1029 = vst [vmem:[%s1646_s14 + $0x30] sm:$0xff] %v997_v3  ;;  %v945_v7 = vmul.f32 %v1632_v49, %v796_v4  ;;  %v758_v8 = vadd.f32 %v757_v6, %v668_v5 }
  0xe5   : > { %v981_v9 = vadd.f32 %v1637_v52, %v945_v7  ;;  %v930_v10 = vmul.f32 %v1632_v49, %v758_v8 }
  0xe7   : > { %v1013_v11 = vmax.f32 %v981_v9, 0.0  ;;  %v966_v12 = vadd.f32 %v1637_v52, %v930_v10  ;;  %v708_v13 = vpop.f32.mrf.mxu2 }
  0xe8   : > { %v797_v14 = vpop.f32.mrf.mxu3 }
  0xe9   : > { %1045 = vst [vmem:[%s1646_s14 + $0xb0] sm:$0xff] %v1013_v11  ;;  %v998_v15 = vmax.f32 %v966_v12, 0.0  ;;  %v798_v16 = vadd.f32 %v797_v14, %v708_v13  ;;  %v671_v17 = vpop.f32.mrf.mxu0 }
  0xea   : > { %v760_v18 = vpop.f32.mrf.mxu1 }
  0xeb   : > { %1030 = vst [vmem:[%s1646_s14 + $0x38] sm:$0xff] %v998_v15  ;;  %v946_v19 = vmul.f32 %v1632_v49, %v798_v16  ;;  %v761_v20 = vadd.f32 %v760_v18, %v671_v17 }
  0xed   : > { %v982_v21 = vadd.f32 %v1637_v52, %v946_v19  ;;  %v931_v22 = vmul.f32 %v1632_v49, %v761_v20 }
  0xef   : > { %v1014_v23 = vmax.f32 %v982_v21, 0.0  ;;  %v967_v24 = vadd.f32 %v1637_v52, %v931_v22  ;;  %v711_v25 = vpop.f32.mrf.mxu2 }
  0xf0   : > { %v800_v26 = vpop.f32.mrf.mxu3 }
  0xf1   : > { %1046 = vst [vmem:[%s1646_s14 + $0xb8] sm:$0xff] %v1014_v23  ;;  %v999_v27 = vmax.f32 %v967_v24, 0.0  ;;  %v801_v28 = vadd.f32 %v800_v26, %v711_v25  ;;  %v673_v29 = vpop.f32.mrf.mxu0 }
  0xf2   : > { %v762_v30 = vpop.f32.mrf.mxu1 }
  0xf3   : > { %1031 = vst [vmem:[%s1646_s14 + $0x40] sm:$0xff] %v999_v27  ;;  %v947_v31 = vmul.f32 %v1632_v49, %v801_v28  ;;  %v763_v32 = vadd.f32 %v762_v30, %v673_v29 }
  0xf5   : > { %v983_v33 = vadd.f32 %v1637_v52, %v947_v31  ;;  %v932_v34 = vmul.f32 %v1632_v49, %v763_v32 }
  0xf7   : > { %v1015_v35 = vmax.f32 %v983_v33, 0.0  ;;  %v968_v36 = vadd.f32 %v1637_v52, %v932_v34  ;;  %v713_v37 = vpop.f32.mrf.mxu2 }
  0xf8   : > { %v802_v38 = vpop.f32.mrf.mxu3 }
  0xf9   : > { %1047 = vst [vmem:[%s1646_s14 + $0xc0] sm:$0xff] %v1015_v35  ;;  %v1000_v39 = vmax.f32 %v968_v36, 0.0  ;;  %v803_v40 = vadd.f32 %v802_v38, %v713_v37  ;;  %v676_v41 = vpop.f32.mrf.mxu0 }
  0xfa   : > { %v765_v42 = vpop.f32.mrf.mxu1 }
  0xfb   : > { %1032 = vst [vmem:[%s1646_s14 + $0x48] sm:$0xff] %v1000_v39  ;;  %v948_v43 = vmul.f32 %v1632_v49, %v803_v40  ;;  %v766_v44 = vadd.f32 %v765_v42, %v676_v41 }
  0xfd   : > { %v984_v45 = vadd.f32 %v1637_v52, %v948_v43  ;;  %v933_v46 = vmul.f32 %v1632_v49, %v766_v44 }
  0xff   : > { %v1016_v47 = vmax.f32 %v984_v45, 0.0  ;;  %v969_v48 = vadd.f32 %v1637_v52, %v933_v46  ;;  %v716_v50 = vpop.f32.mrf.mxu2 }
 0x100   : > { %v805_v51 = vpop.f32.mrf.mxu3 }
 0x101   : > { %1048 = vst [vmem:[%s1646_s14 + $0xc8] sm:$0xff] %v1016_v47  ;;  %v1001_v53 = vmax.f32 %v969_v48, 0.0  ;;  %v806_v54 = vadd.f32 %v805_v51, %v716_v50  ;;  %v678_v55 = vpop.f32.mrf.mxu0 }
 0x102   : > { %v767_v56 = vpop.f32.mrf.mxu1 }
 0x103   : > { %1033 = vst [vmem:[%s1646_s14 + $0x50] sm:$0xff] %v1001_v53  ;;  %v949_v57 = vmul.f32 %v1632_v49, %v806_v54  ;;  %v768_v58 = vadd.f32 %v767_v56, %v678_v55 }
 0x105   : > { %v985_v59 = vadd.f32 %v1637_v52, %v949_v57  ;;  %v934_v60 = vmul.f32 %v1632_v49, %v768_v58 }
 0x107   : > { %v1017_v61 = vmax.f32 %v985_v59, 0.0  ;;  %v970_v62 = vadd.f32 %v1637_v52, %v934_v60  ;;  %v718_v63 = vpop.f32.mrf.mxu2 }
 0x108   : > { %v807_v0 = vpop.f32.mrf.mxu3 }
 0x109   : > { %1049 = vst [vmem:[%s1646_s14 + $0xd0] sm:$0xff] %v1017_v61  ;;  %v1002_v1 = vmax.f32 %v970_v62, 0.0  ;;  %v808_v2 = vadd.f32 %v807_v0, %v718_v63  ;;  %v681_v3 = vpop.f32.mrf.mxu0 }
 0x10a   : > { %v770_v4 = vpop.f32.mrf.mxu1 }
 0x10b   : > { %1034 = vst [vmem:[%s1646_s14 + $0x58] sm:$0xff] %v1002_v1  ;;  %v950_v5 = vmul.f32 %v1632_v49, %v808_v2  ;;  %v771_v6 = vadd.f32 %v770_v4, %v681_v3 }
 0x10d   : > { %v986_v7 = vadd.f32 %v1637_v52, %v950_v5  ;;  %v935_v8 = vmul.f32 %v1632_v49, %v771_v6 }
 0x10f   : > { %v1018_v9 = vmax.f32 %v986_v7, 0.0  ;;  %v971_v10 = vadd.f32 %v1637_v52, %v935_v8  ;;  %v721_v11 = vpop.f32.mrf.mxu2 }
 0x110   : > { %v810_v12 = vpop.f32.mrf.mxu3 }
 0x111   : > { %1050 = vst [vmem:[%s1646_s14 + $0xd8] sm:$0xff] %v1018_v9  ;;  %v1003_v13 = vmax.f32 %v971_v10, 0.0  ;;  %v811_v14 = vadd.f32 %v810_v12, %v721_v11  ;;  %v683_v15 = vpop.f32.mrf.mxu0 }
 0x112   : > { %v772_v16 = vpop.f32.mrf.mxu1 }
 0x113   : > { %1035 = vst [vmem:[%s1646_s14 + $0x60] sm:$0xff] %v1003_v13  ;;  %v951_v17 = vmul.f32 %v1632_v49, %v811_v14  ;;  %v773_v18 = vadd.f32 %v772_v16, %v683_v15 }
 0x115   : > { %v987_v19 = vadd.f32 %v1637_v52, %v951_v17  ;;  %v936_v20 = vmul.f32 %v1632_v49, %v773_v18 }
 0x117   : > { %v1019_v21 = vmax.f32 %v987_v19, 0.0  ;;  %v972_v22 = vadd.f32 %v1637_v52, %v936_v20  ;;  %v723_v23 = vpop.f32.mrf.mxu2 }
 0x118   : > { %v812_v24 = vpop.f32.mrf.mxu3 }
 0x119   : > { %1051 = vst [vmem:[%s1646_s14 + $0xe0] sm:$0xff] %v1019_v21  ;;  %v1004_v25 = vmax.f32 %v972_v22, 0.0  ;;  %v813_v26 = vadd.f32 %v812_v24, %v723_v23  ;;  %v686_v27 = vpop.f32.mrf.mxu0 }
 0x11a   : > { %v775_v28 = vpop.f32.mrf.mxu1 }
 0x11b   : > { %1036 = vst [vmem:[%s1646_s14 + $0x68] sm:$0xff] %v1004_v25  ;;  %v952_v29 = vmul.f32 %v1632_v49, %v813_v26  ;;  %v776_v30 = vadd.f32 %v775_v28, %v686_v27 }
 0x11d   : > { %v988_v31 = vadd.f32 %v1637_v52, %v952_v29  ;;  %v937_v32 = vmul.f32 %v1632_v49, %v776_v30 }
 0x11f   : > { %v1020_v33 = vmax.f32 %v988_v31, 0.0  ;;  %v973_v34 = vadd.f32 %v1637_v52, %v937_v32  ;;  %v726_v35 = vpop.f32.mrf.mxu2 }
 0x120   : > { %v815_v36 = vpop.f32.mrf.mxu3 }
 0x121   : > { %1052 = vst [vmem:[%s1646_s14 + $0xe8] sm:$0xff] %v1020_v33  ;;  %v1005_v37 = vmax.f32 %v973_v34, 0.0  ;;  %v816_v38 = vadd.f32 %v815_v36, %v726_v35  ;;  %v688_v39 = vpop.f32.mrf.mxu0 }
 0x122   : > { %v777_v40 = vpop.f32.mrf.mxu1 }
 0x123   : > { %1037 = vst [vmem:[%s1646_s14 + $0x70] sm:$0xff] %v1005_v37  ;;  %v953_v41 = vmul.f32 %v1632_v49, %v816_v38  ;;  %v778_v42 = vadd.f32 %v777_v40, %v688_v39 }
 0x125   : > { %v989_v43 = vadd.f32 %v1637_v52, %v953_v41  ;;  %v938_v44 = vmul.f32 %v1632_v49, %v778_v42 }
 0x127   : > { %v1021_v45 = vmax.f32 %v989_v43, 0.0  ;;  %v974_v46 = vadd.f32 %v1637_v52, %v938_v44  ;;  %v728_v47 = vpop.f32.mrf.mxu2 }
 0x128   : > { %v817_v48 = vpop.f32.mrf.mxu3 }
 0x129   : > { %1053 = vst [vmem:[%s1646_s14 + $0xf0] sm:$0xff] %v1021_v45  ;;  %v1006_v50 = vmax.f32 %v974_v46, 0.0  ;;  %v818_v51 = vadd.f32 %v817_v48, %v728_v47 }
 0x12b   : > { %1038 = vst [vmem:[%s1646_s14 + $0x78] sm:$0xff] %v1006_v50  ;;  %v954_v53 = vmul.f32 %v1632_v49, %v818_v51 }
 0x12d   : > { %v990_v54 = vadd.f32 %v1637_v52, %v954_v53 }
 0x12f   : > { %v1022_v55 = vmax.f32 %v990_v54, 0.0 }
 0x131   : > { %1054 = vst [vmem:[%s1646_s14 + $0xf8] sm:$0xff] %v1022_v55 }
 0x132 PF: > { %s14_s17 = sadd.s32 1, %s1459_s17   ;;  %s1756_s15 = smov %s1455_s16 }
 0x133   : > { %p11_p5 = scmp.ge.s32.totalorder %s14_s17, 4   ;;  %s1757_s16 = smov %s1759_s18 }
 0x135   :  { %13 = sbr.rel (!%p11_p5) target bundleno = 2 (0x2), region = 77 }

// kernel: encoder_cnn_forward.9
= control target key start
LH: loop header
LB: loop body
LE: loop exit
PB: predicated region body
PF: predicated region fallthrough
CT: control target
= control target key end

     0   :  { %s1002_s6 = smov 0   ;;  %s1469_s0 = inlined_call_operand.vmem [shape: f32[128,9,128], index: 0, kind: input, shape index: {}]   ;;  %s1470_s1 = inlined_call_operand.vmem [shape: f32[128,128], index: 1, kind: output, shape index: {}]  }
   0x1 LB: > { %s963_s7 = sadd.s32 4294967295, %s990_s6   ;;  %p967_p0 = scmp.ge.s32.totalorder %s990_s6, 1  ;;  %s990_s6 = sphi %s1002_s6, %s11_s6  }
   0x2   : > { %p89_p1 = scmp.lt.s32.totalorder %s990_s6, 3 }
   0x4   : > { %p90_p2 = pnand %p967_p0, %p89_p1 }
   0x6   : > { %93 = sbr.rel (%p90_p2) target bundleno = 165 (0xa5), region = 24 }
   0xb   : > { %s968_s8 = sshll.u32 %s963_s7, 6  ;;  %vm251_vm0 = vcmask 1040384   ;;  %s1305_s13 = sshll.u32 %s963_s7, 3  ;;  %vm828_vm1 = vcmask 1041409   ;;  %vm830_vm2 = vcmask 1042434   ;;  %vm832_vm3 = vcmask 1043459  }
   0xc   : > { %p111_p3 = scmp.lt.s32.totalorder %s968_s8, 127  ;;  %p118_p4 = scmp.lt.s32.totalorder %s1305_s13, 15  ;;  %vm834_vm4 = vcmask 1044484   ;;  %vm836_vm5 = vcmask 1045509   ;;  %vm838_vm6 = vcmask 1046534   ;;  %vm840_vm7 = vcmask 1047559  }
   0xe   : > { %s1514_s8 = smov (!%p111_p3, %s968_s8), 127  ;;  %s1516_s13 = smov (!%p118_p4, %s1305_s13), 15 }
   0xf   : > { %s975_s9 = sshll.u32 %s1514_s8, 4  ;;  %s972_s14 = sshll.u32 %s1516_s13, 3 }
  0x10   : > { %s1015_s12 = scalar_lea.vmem %s1469_s0, %s975_s9  ;;  %s1350_s17 = scalar_lea.vmem %s1470_s1, %s972_s14 }
  0x11   : > { %v124_v0 = vld [vmem:[%s1015_s12 + $0x8] sm:$0x1]  ;;  %v126_v1 = vld [vmem:[%s1015_s12 + $0x18] sm:$0x1]  ;;  %v123_v2 = vld [vmem:[%s1015_s12] sm:$0xff] }
  0x12   : > { %v128_v3 = vld [vmem:[%s1015_s12 + $0x28] sm:$0x1]  ;;  %v125_v4 = vld [vmem:[%s1015_s12 + $0x10] sm:$0xff]  ;;  %v252_v5 = vsel %vm251_vm0, %v124_v0, -inf  ;;  %v130_v6 = vld [vmem:[%s1015_s12 + $0x38] sm:$0x1] }
  0x13   : > { %v260_v7 = vsel %vm251_vm0, %v126_v1, -inf  ;;  %v127_v8 = vld [vmem:[%s1015_s12 + $0x20] sm:$0xff]  ;;  %v132_v9 = vld [vmem:[%s1015_s12 + $0x48] sm:$0x1]  ;;  %v253_v10 = vmax.f32 %v123_v2, %v252_v5  ;;  %v268_v11 = vsel %vm251_vm0, %v128_v3, -inf  ;;  %v129_v13 = vld [vmem:[%s1015_s12 + $0x30] sm:$0xff] }
  0x14   : > { %v261_v12 = vmax.f32 %v125_v4, %v260_v7  ;;  %v134_v14 = vld [vmem:[%s1015_s12 + $0x58] sm:$0x1]  ;;  %v276_v15 = vsel %vm251_vm0, %v130_v6, -inf  ;;  %v131_v16 = vld [vmem:[%s1015_s12 + $0x40] sm:$0xff]  ;;  %v133_v17 = vld [vmem:[%s1015_s12 + $0x50] sm:$0xff]  ;;  %v269_v18 = vmax.f32 %v127_v8, %v268_v11  ;;  %v284_v19 = vsel %vm251_vm0, %v132_v9, -inf }
  0x15   : > { %v254_v20 = vrot.slane %v253_v10, 4  ;;  %v277_v22 = vmax.f32 %v129_v13, %v276_v15  ;;  %v292_v23 = vsel %vm251_vm0, %v134_v14, -inf  ;;  %v285_v24 = vmax.f32 %v131_v16, %v284_v19  ;;  %v136_v30 = vld [vmem:[%s1015_s12 + $0x68] sm:$0x1]  ;;  %v135_v33 = vld [vmem:[%s1015_s12 + $0x60] sm:$0xff]  ;;  %v137_v36 = vld [vmem:[%s1015_s12 + $0x70] sm:$0xff] }
  0x16   : > { %v262_v21 = vrot.slane %v261_v12, 4  ;;  %v293_v25 = vmax.f32 %v133_v17, %v292_v23  ;;  %v270_v26 = vrot.slane %v269_v18, 4  ;;  %v138_v34 = vld [vmem:[%s1015_s12 + $0x78] sm:$0x1]  ;;  %v140_v37 = vld [vmem:[%s1015_s12 + $0x88] sm:$0x1] }
  0x17   : > { %v255_v27 = vmax.f32 %v253_v10, %v254_v20  ;;  %v278_v29 = vrot.slane %v277_v22, 4  ;;  %v286_v31 = vrot.slane %v285_v24, 4  ;;  %v142_v38 = vld [vmem:[%s1015_s12 + $0x98] sm:$0x1]  ;;  %v139_v40 = vld [vmem:[%s1015_s12 + $0x80] sm:$0xff]  ;;  %v141_v41 = vld [vmem:[%s1015_s12 + $0x90] sm:$0xff] }
  0x18   : > { %v263_v28 = vmax.f32 %v261_v12, %v262_v21  ;;  %v294_v32 = vrot.slane %v293_v25, 4  ;;  %v271_v35 = vmax.f32 %v269_v18, %v270_v26  ;;  %v300_v44 = vsel %vm251_vm0, %v136_v30, -inf  ;;  %v144_v53 = vld [vmem:[%s1015_s12 + $0xa8] sm:$0x1]  ;;  %v143_v58 = vld [vmem:[%s1015_s12 + $0xa0] sm:$0xff]  ;;  %v145_v3 = vld [vmem:[%s1015_s12 + $0xb0] sm:$0xff] }
  0x19   : > { %v256_v39 = vrot.slane %v255_v27, 2  ;;  %v279_v43 = vmax.f32 %v277_v22, %v278_v29  ;;  %v287_v45 = vmax.f32 %v285_v24, %v286_v31  ;;  %v301_v47 = vmax.f32 %v135_v33, %v300_v44  ;;  %v146_v62 = vld [vmem:[%s1015_s12 + $0xb8] sm:$0x1]  ;;  %v147_v31 = vld [vmem:[%s1015_s12 + $0xc0] sm:$0xff] }
  0x1a   : > { %v264_v42 = vrot.slane %v263_v28, 2  ;;  %v295_v46 = vmax.f32 %v293_v25, %v294_v32  ;;  %v308_v48 = vsel %vm251_vm0, %v138_v34, -inf  ;;  %v272_v49 = vrot.slane %v271_v35, 2 }
  0x1b   : > { %v309_v50 = vmax.f32 %v137_v36, %v308_v48  ;;  %v316_v51 = vsel %vm251_vm0, %v140_v37, -inf  ;;  %v324_v52 = vsel %vm251_vm0, %v142_v38, -inf  ;;  %v257_v54 = vmax.f32 %v255_v27, %v256_v39  ;;  %v148_v27 = vld [vmem:[%s1015_s12 + $0xc8] sm:$0x1]  ;;  %v150_v36 = vld [vmem:[%s1015_s12 + $0xd8] sm:$0x1] }
  0x1c   : > { %v302_v55 = vrot.slane %v301_v47, 4  ;;  %v317_v56 = vmax.f32 %v139_v40, %v316_v51  ;;  %v325_v57 = vmax.f32 %v141_v41, %v324_v52  ;;  %v265_v59 = vmax.f32 %v263_v28, %v264_v42  ;;  %v149_v41 = vld [vmem:[%s1015_s12 + $0xd0] sm:$0xff]  ;;  %v151_v51 = vld [vmem:[%s1015_s12 + $0xe0] sm:$0xff]  ;;  %v154_v52 = vld [vmem:[%s1015_s12 + $0xf8] sm:$0x1] }
  0x1d   : > { %v280_v60 = vrot.slane %v279_v43, 2  ;;  %v310_v61 = vrot.slane %v309_v50, 4  ;;  %v288_v63 = vrot.slane %v287_v45, 2  ;;  %v296_v0 = vrot.slane %v295_v46, 2 }
  0x1e   : > { %v303_v1 = vmax.f32 %v301_v47, %v302_v55  ;;  %v318_v2 = vrot.slane %v317_v56, 4  ;;  %v273_v4 = vmax.f32 %v271_v35, %v272_v49  ;;  %v326_v6 = vrot.slane %v325_v57, 4 }
  0x1f   : > { %v311_v5 = vmax.f32 %v309_v50, %v310_v61  ;;  %v332_v7 = vsel %vm251_vm0, %v144_v53, -inf  ;;  %v258_v8 = vrot.slane %v257_v54, 1  ;;  %v281_v12 = vmax.f32 %v279_v43, %v280_v60 }
  0x20   : > { %v304_v9 = vrot.slane %v303_v1, 2  ;;  %v319_v10 = vmax.f32 %v317_v56, %v318_v2  ;;  %v333_v11 = vmax.f32 %v143_v58, %v332_v7  ;;  %v327_v14 = vmax.f32 %v325_v57, %v326_v6  ;;  %v156_v57 = vld [vmem:[%s1015_s12 + $0x108] sm:$0x1]  ;;  %v158_v58 = vld [vmem:[%s1015_s12 + $0x118] sm:$0x1] }
  0x21   : > { %v312_v13 = vrot.slane %v311_v5, 2  ;;  %v340_v15 = vsel %vm251_vm0, %v146_v62, -inf  ;;  %v289_v16 = vmax.f32 %v287_v45, %v288_v63  ;;  %v297_v17 = vmax.f32 %v295_v46, %v296_v0  ;;  %v152_v46 = vld [vmem:[%s1015_s12 + $0xe8] sm:$0x1]  ;;  %v153_v63 = vld [vmem:[%s1015_s12 + $0xf0] sm:$0xff] }
  0x22   : > { %v320_v18 = vrot.slane %v319_v10, 2  ;;  %v341_v19 = vmax.f32 %v145_v3, %v340_v15  ;;  %v266_v20 = vrot.slane %v265_v59, 1  ;;  %v274_v21 = vrot.slane %v273_v4, 1  ;;  %v160_v6 = vld [vmem:[%s1015_s12 + $0x128] sm:$0x1] }
  0x23   : > { %v328_v22 = vrot.slane %v327_v14, 2  ;;  %v334_v23 = vrot.slane %v333_v11, 4  ;;  %v305_v24 = vmax.f32 %v303_v1, %v304_v9  ;;  %v313_v25 = vmax.f32 %v311_v5, %v312_v13  ;;  %v157_v5 = vld [vmem:[%s1015_s12 + $0x110] sm:$0xff] }
  0x24   : > { %v321_v26 = vmax.f32 %v319_v10, %v320_v18  ;;  %v342_v30 = vrot.slane %v341_v19, 4  ;;  %v1055_v32 = vmax.f32 %v257_v54, %v258_v8  ;;  %v282_v33 = vrot.slane %v281_v12, 1 }
  0x25   : > { %v329_v28 = vmax.f32 %v327_v14, %v328_v22  ;;  %v335_v29 = vmax.f32 %v333_v11, %v334_v23  ;;  %v290_v34 = vrot.slane %v289_v16, 1  ;;  %v298_v35 = vrot.slane %v297_v17, 1  ;;  %v159_v11 = vld [vmem:[%s1015_s12 + $0x120] sm:$0xff] }
  0x26   : > { %v1058_v37 = vmax.f32 %v265_v59, %v266_v20  ;;  %v1060_v38 = vmax.f32 %v273_v4, %v274_v21  ;;  %v343_v40 = vmax.f32 %v341_v19, %v342_v30  ;;  %v306_v42 = vrot.slane %v305_v24, 1  ;;  %v155_v4 = vld [vmem:[%s1015_s12 + $0x100] sm:$0xff] }
  0x27   : > { %v336_v39 = vrot.slane %v335_v29, 2  ;;  %v314_v43 = vrot.slane %v313_v25, 1  ;;  %v322_v44 = vrot.slane %v321_v26, 1  ;;  %v348_v45 = vsel %vm251_vm0, %v148_v27, -inf }
  0x28   : > { %v330_v47 = vrot.slane %v329_v28, 1  ;;  %v344_v49 = vrot.slane %v343_v40, 2  ;;  %v349_v50 = vmax.f32 %v147_v31, %v348_v45  ;;  %v1067_v53 = vmax.f32 %v281_v12, %v282_v33 }
  0x29   : > { %v337_v48 = vmax.f32 %v335_v29, %v336_v39  ;;  %v1069_v54 = vmax.f32 %v289_v16, %v290_v34  ;;  %v1071_v55 = vmax.f32 %v297_v17, %v298_v35  ;;  %v356_v56 = vsel %vm251_vm0, %v150_v36, -inf  ;;  %v162_v16 = vld [vmem:[%s1015_s12 + $0x138] sm:$0x1] }
  0x2a   : > { %v345_v60 = vmax.f32 %v343_v40, %v344_v49  ;;  %v350_v61 = vrot.slane %v349_v50, 4  ;;  %v357_v62 = vmax.f32 %v149_v41, %v356_v56  ;;  %v1077_v0 = vmax.f32 %v305_v24, %v306_v42  ;;  %v164_v41 = vld [vmem:[%s1015_s12 + $0x148] sm:$0x1] }
  0x2b   : > { %v338_v59 = vrot.slane %v337_v48, 1  ;;  %v1079_v1 = vmax.f32 %v313_v25, %v314_v43  ;;  %v1081_v2 = vmax.f32 %v321_v26, %v322_v44  ;;  %v364_v3 = vsel %vm251_vm0, %v152_v46, -inf  ;;  %v161_v25 = vld [vmem:[%s1015_s12 + $0x130] sm:$0xff] }
  0x2c   : > { %v1087_v7 = vmax.f32 %v329_v28, %v330_v47  ;;  %v351_v9 = vmax.f32 %v349_v50, %v350_v61  ;;  %v358_v10 = vrot.slane %v357_v62, 4  ;;  %v365_v12 = vmax.f32 %v151_v51, %v364_v3  ;;  %v163_v50 = vld [vmem:[%s1015_s12 + $0x140] sm:$0xff]  ;;  %v166_v51 = vld [vmem:[%s1015_s12 + $0x158] sm:$0x1] }
  0x2d   : > { %v1089_v8 = vmax.f32 %v337_v48, %v338_v59  ;;  %v372_v13 = vsel %vm251_vm0, %v154_v52, -inf  ;;  %v380_v14 = vsel %vm251_vm0, %v156_v57, -inf  ;;  %v388_v15 = vsel %vm251_vm0, %v158_v58, -inf }
  0x2e   : > { %v346_v17 = vrot.slane %v345_v60, 1  ;;  %v352_v18 = vrot.slane %v351_v9, 2  ;;  %v359_v19 = vmax.f32 %v357_v62, %v358_v10  ;;  %v373_v20 = vmax.f32 %v153_v63, %v372_v13 }
  0x2f   : > { %v366_v21 = vrot.slane %v365_v12, 4  ;;  %v381_v22 = vmax.f32 %v155_v4, %v380_v14  ;;  %v389_v23 = vmax.f32 %v157_v5, %v388_v15  ;;  %v396_v24 = vsel %vm251_vm0, %v160_v6, -inf  ;;  %v167_v14 = vld [vmem:[%s1015_s12 + $0x160] sm:$0xff]  ;;  %v170_v15 = vld [vmem:[%s1015_s12 + $0x178] sm:$0x1] }
  0x30   : > { %v353_v26 = vmax.f32 %v351_v9, %v352_v18  ;;  %v360_v27 = vrot.slane %v359_v19, 2  ;;  %v374_v28 = vrot.slane %v373_v20, 4  ;;  %v397_v29 = vmax.f32 %v159_v11, %v396_v24  ;;  %v168_v9 = vld [vmem:[%s1015_s12 + $0x168] sm:$0x1] }
  0x31   : > { %v367_v30 = vmax.f32 %v365_v12, %v366_v21  ;;  %v382_v31 = vrot.slane %v381_v22, 4  ;;  %v390_v33 = vrot.slane %v389_v23, 4  ;;  %v404_v34 = vsel %vm251_vm0, %v162_v16, -inf  ;;  %v174_v21 = vld [vmem:[%s1015_s12 + $0x198] sm:$0x1] }
  0x32   : > { %v354_v35 = vrot.slane %v353_v26, 1  ;;  %v361_v36 = vmax.f32 %v359_v19, %v360_v27  ;;  %v375_v39 = vmax.f32 %v373_v20, %v374_v28  ;;  %v398_v40 = vrot.slane %v397_v29, 4  ;;  %v172_v20 = vld [vmem:[%s1015_s12 + $0x188] sm:$0x1] }
  0x33   : > { %v368_v42 = vrot.slane %v367_v30, 2  ;;  %v383_v43 = vmax.f32 %v381_v22, %v382_v31  ;;  %v391_v44 = vmax.f32 %v389_v23, %v390_v33  ;;  %v405_v45 = vmax.f32 %v161_v25, %v404_v34  ;;  %v171_v31 = vld [vmem:[%s1015_s12 + $0x180] sm:$0xff]  ;;  %v173_v33 = vld [vmem:[%s1015_s12 + $0x190] sm:$0xff]  ;;  %v176_v34 = vld [vmem:[%s1015_s12 + $0x1a8] sm:$0x1] }
  0x34   : > { %v1100_v46 = vmax.f32 %v345_v60, %v346_v17  ;;  %v362_v47 = vrot.slane %v361_v36, 1  ;;  %v376_v48 = vrot.slane %v375_v39, 2  ;;  %v399_v49 = vmax.f32 %v397_v29, %v398_v40  ;;  %v165_v60 = vld [vmem:[%s1015_s12 + $0x150] sm:$0xff] }
  0x35   : > { %v369_v52 = vmax.f32 %v367_v30, %v368_v42  ;;  %v384_v56 = vrot.slane %v383_v43, 2  ;;  %v392_v57 = vrot.slane %v391_v44, 2  ;;  %v406_v58 = vrot.slane %v405_v45, 4 }
  0x36   : > { %v1104_v59 = vmax.f32 %v353_v26, %v354_v35  ;;  %v377_v61 = vmax.f32 %v375_v39, %v376_v48  ;;  %v400_v62 = vrot.slane %v399_v49, 2  ;;  %v412_v63 = vsel %vm251_vm0, %v164_v41, -inf  ;;  %v169_v26 = vld [vmem:[%s1015_s12 + $0x170] sm:$0xff] }
  0x37   : > { %v370_v3 = vrot.slane %v369_v52, 1  ;;  %v385_v4 = vmax.f32 %v383_v43, %v384_v56  ;;  %v393_v5 = vmax.f32 %v391_v44, %v392_v57  ;;  %v407_v6 = vmax.f32 %v405_v45, %v406_v58  ;;  %v175_v45 = vld [vmem:[%s1015_s12 + $0x1a0] sm:$0xff] }
  0x38   : > { %v378_v10 = vrot.slane %v377_v61, 1  ;;  %v401_v11 = vmax.f32 %v399_v49, %v400_v62  ;;  %v413_v12 = vmax.f32 %v163_v50, %v412_v63  ;;  %v420_v13 = vsel %vm251_vm0, %v166_v51, -inf }
  0x39   : > { %v1112_v16 = vmax.f32 %v361_v36, %v362_v47  ;;  %v386_v17 = vrot.slane %v385_v4, 1  ;;  %v394_v18 = vrot.slane %v393_v5, 1  ;;  %v408_v19 = vrot.slane %v407_v6, 2  ;;  %v178_v47 = vld [vmem:[%s1015_s12 + $0x1b8] sm:$0x1] }
  0x3a   : > { %v1116_v22 = vmax.f32 %v369_v52, %v370_v3  ;;  %v402_v23 = vrot.slane %v401_v11, 1  ;;  %v414_v24 = vrot.slane %v413_v12, 4  ;;  %v421_v25 = vmax.f32 %v165_v60, %v420_v13 }
  0x3b   : > { %v1119_v27 = vmax.f32 %v377_v61, %v378_v10  ;;  %v1121_v28 = vmax.f32 %v385_v4, %v386_v17  ;;  %v409_v29 = vmax.f32 %v407_v6, %v408_v19  ;;  %v428_v30 = vsel %vm251_vm0, %v168_v9, -inf  ;;  %v177_v61 = vld [vmem:[%s1015_s12 + $0x1b0] sm:$0xff] }
  0x3c   : > { %v1127_v35 = vmax.f32 %v393_v5, %v394_v18  ;;  %v415_v36 = vmax.f32 %v413_v12, %v414_v24  ;;  %v422_v39 = vrot.slane %v421_v25, 4  ;;  %v429_v40 = vmax.f32 %v167_v14, %v428_v30  ;;  %v180_v14 = vld [vmem:[%s1015_s12 + $0x1c8] sm:$0x1] }
  0x3d   : > { %v1129_v41 = vmax.f32 %v401_v11, %v402_v23  ;;  %v436_v42 = vsel %vm251_vm0, %v170_v15, -inf  ;;  %v444_v43 = vsel %vm251_vm0, %v172_v20, -inf  ;;  %v452_v44 = vsel %vm251_vm0, %v174_v21, -inf }
  0x3e   : > { %v416_v48 = vrot.slane %v415_v36, 2  ;;  %v423_v49 = vmax.f32 %v421_v25, %v422_v39  ;;  %v430_v50 = vrot.slane %v429_v40, 4  ;;  %v437_v51 = vmax.f32 %v169_v26, %v436_v42  ;;  %v179_v25 = vld [vmem:[%s1015_s12 + $0x1c0] sm:$0xff]  ;;  %v182_v26 = vld [vmem:[%s1015_s12 + $0x1d8] sm:$0x1] }
  0x3f   : > { %v410_v52 = vrot.slane %v409_v29, 1  ;;  %v445_v56 = vmax.f32 %v171_v31, %v444_v43  ;;  %v453_v57 = vmax.f32 %v173_v33, %v452_v44  ;;  %v460_v58 = vsel %vm251_vm0, %v176_v34, -inf  ;;  %v181_v43 = vld [vmem:[%s1015_s12 + $0x1d0] sm:$0xff] }
  0x40   : > { %v417_v62 = vmax.f32 %v415_v36, %v416_v48  ;;  %v424_v63 = vrot.slane %v423_v49, 2  ;;  %v431_v60 = vmax.f32 %v429_v40, %v430_v50  ;;  %v438_v3 = vrot.slane %v437_v51, 4 }
  0x41   : > { %v446_v4 = vrot.slane %v445_v56, 4  ;;  %v454_v5 = vrot.slane %v453_v57, 4  ;;  %v461_v6 = vmax.f32 %v175_v45, %v460_v58  ;;  %v468_v9 = vsel %vm251_vm0, %v178_v47, -inf }
  0x42   : > { %v418_v10 = vrot.slane %v417_v62, 1  ;;  %v425_v11 = vmax.f32 %v423_v49, %v424_v63  ;;  %v432_v12 = vrot.slane %v431_v60, 2  ;;  %v439_v13 = vmax.f32 %v437_v51, %v438_v3  ;;  %v188_v3 = vld [vmem:[%s1015_s12 + $0x208] sm:$0x1] }
  0x43   : > { %v447_v15 = vmax.f32 %v445_v56, %v446_v4  ;;  %v455_v17 = vmax.f32 %v453_v57, %v454_v5  ;;  %v462_v18 = vrot.slane %v461_v6, 4  ;;  %v469_v19 = vmax.f32 %v177_v61, %v468_v9  ;;  %v183_v56 = vld [vmem:[%s1015_s12 + $0x1e0] sm:$0xff]  ;;  %v186_v57 = vld [vmem:[%s1015_s12 + $0x1f8] sm:$0x1] }
  0x44   : > { %v1140_v20 = vmax.f32 %v409_v29, %v410_v52  ;;  %v426_v21 = vrot.slane %v425_v11, 1  ;;  %v433_v23 = vmax.f32 %v431_v60, %v432_v12  ;;  %v440_v24 = vrot.slane %v439_v13, 2  ;;  %v184_v29 = vld [vmem:[%s1015_s12 + $0x1e8] sm:$0x1]  ;;  %v185_v60 = vld [vmem:[%s1015_s12 + $0x1f0] sm:$0xff] }
  0x45   : > { %v448_v30 = vrot.slane %v447_v15, 2  ;;  %v456_v31 = vrot.slane %v455_v17, 2  ;;  %v463_v33 = vmax.f32 %v461_v6, %v462_v18  ;;  %v470_v34 = vrot.slane %v469_v19, 4 }
  0x46   : > { %v1144_v36 = vmax.f32 %v417_v62, %v418_v10  ;;  %v434_v39 = vrot.slane %v433_v23, 1  ;;  %v441_v40 = vmax.f32 %v439_v13, %v440_v24  ;;  %v476_v42 = vsel %vm251_vm0, %v180_v14, -inf  ;;  %v187_v10 = vld [vmem:[%s1015_s12 + $0x200] sm:$0xff] }
  0x47   : > { %v449_v44 = vmax.f32 %v447_v15, %v448_v30  ;;  %v457_v45 = vmax.f32 %v455_v17, %v456_v31  ;;  %v464_v47 = vrot.slane %v463_v33, 2  ;;  %v471_v48 = vmax.f32 %v469_v19, %v470_v34  ;;  %v190_v15 = vld [vmem:[%s1015_s12 + $0x218] sm:$0x1]  ;;  %v192_v17 = vld [vmem:[%s1015_s12 + $0x228] sm:$0x1]  ;;  %v189_v31 = vld [vmem:[%s1015_s12 + $0x210] sm:$0xff] }
  0x48   : > { %v1149_v49 = vmax.f32 %v425_v11, %v426_v21  ;;  %v442_v50 = vrot.slane %v441_v40, 1  ;;  %v477_v51 = vmax.f32 %v179_v25, %v476_v42  ;;  %v484_v52 = vsel %vm251_vm0, %v182_v26, -inf  ;;  %v194_v34 = vld [vmem:[%s1015_s12 + $0x238] sm:$0x1] }
  0x49   : > { %v450_v58 = vrot.slane %v449_v44, 1  ;;  %v458_v61 = vrot.slane %v457_v45, 1  ;;  %v465_v62 = vmax.f32 %v463_v33, %v464_v47  ;;  %v472_v63 = vrot.slane %v471_v48, 2  ;;  %v191_v33 = vld [vmem:[%s1015_s12 + $0x220] sm:$0xff] }
  0x4a   : > { %v1156_v4 = vmax.f32 %v433_v23, %v434_v39  ;;  %v478_v5 = vrot.slane %v477_v51, 4  ;;  %v485_v6 = vmax.f32 %v181_v43, %v484_v52  ;;  %v492_v9 = vsel %vm251_vm0, %v184_v29, -inf }
  0x4b   : > { %v1160_v11 = vmax.f32 %v441_v40, %v442_v50  ;;  %v1162_v12 = vmax.f32 %v449_v44, %v450_v58  ;;  %v466_v13 = vrot.slane %v465_v62, 1  ;;  %v473_v14 = vmax.f32 %v471_v48, %v472_v63  ;;  %v193_v48 = vld [vmem:[%s1015_s12 + $0x230] sm:$0xff] }
  0x4c   : > { %v479_v18 = vmax.f32 %v477_v51, %v478_v5  ;;  %v486_v19 = vrot.slane %v485_v6, 4  ;;  %v493_v21 = vmax.f32 %v183_v56, %v492_v9  ;;  %v500_v23 = vsel %vm251_vm0, %v186_v57, -inf }
  0x4d   : > { %1471 = vst [vmem:[#allocation2_spill] sm:$0xff] %v1160_v11  ;;  %v1167_v24 = vmax.f32 %v457_v45, %v458_v61  ;;  %v1169_v25 = vmax.f32 %v465_v62, %v466_v13  ;;  %v501_v26 = vmax.f32 %v185_v60, %v500_v23  ;;  %v508_v30 = vsel %vm251_vm0, %v188_v3, -inf  ;;  %v195_v23 = vld [vmem:[%s1015_s12 + $0x240] sm:$0xff] }
  0x4e   : > { %v480_v39 = vrot.slane %v479_v18, 2  ;;  %v487_v40 = vmax.f32 %v485_v6, %v486_v19  ;;  %v494_v42 = vrot.slane %v493_v21, 4  ;;  %v509_v43 = vmax.f32 %v187_v10, %v508_v30  ;;  %v196_v6 = vld [vmem:[%s1015_s12 + $0x248] sm:$0x1] }
  0x4f   : > { %v474_v29 = vrot.slane %v473_v14, 1  ;;  %v502_v44 = vrot.slane %v501_v26, 4  ;;  %v516_v47 = vsel %vm251_vm0, %v190_v15, -inf  ;;  %v524_v45 = vsel %vm251_vm0, %v192_v17, -inf }
  0x50   : > { %v481_v50 = vmax.f32 %v479_v18, %v480_v39  ;;  %v488_v51 = vrot.slane %v487_v40, 2  ;;  %v495_v52 = vmax.f32 %v493_v21, %v494_v42  ;;  %v510_v56 = vrot.slane %v509_v43, 4 }
  0x51   : > { %v503_v57 = vmax.f32 %v501_v26, %v502_v44  ;;  %v517_v58 = vmax.f32 %v189_v31, %v516_v47  ;;  %v525_v61 = vmax.f32 %v191_v33, %v524_v45  ;;  %v532_v62 = vsel %vm251_vm0, %v194_v34, -inf  ;;  %v198_v26 = vld [vmem:[%s1015_s12 + $0x258] sm:$0x1] }
  0x52   : > { %v482_v63 = vrot.slane %v481_v50, 1  ;;  %v489_v60 = vmax.f32 %v487_v40, %v488_v51  ;;  %v496_v3 = vrot.slane %v495_v52, 2  ;;  %v511_v5 = vmax.f32 %v509_v43, %v510_v56  ;;  %v199_v51 = vld [vmem:[%s1015_s12 + $0x260] sm:$0xff] }
  0x53   : > { %v504_v9 = vrot.slane %v503_v57, 2  ;;  %v518_v10 = vrot.slane %v517_v58, 4  ;;  %v526_v13 = vrot.slane %v525_v61, 4  ;;  %v533_v15 = vmax.f32 %v193_v48, %v532_v62 }
  0x54   : > { %v1180_v17 = vmax.f32 %v473_v14, %v474_v29  ;;  %v490_v18 = vrot.slane %v489_v60, 1  ;;  %v497_v19 = vmax.f32 %v495_v52, %v496_v3  ;;  %v512_v21 = vrot.slane %v511_v5, 2  ;;  %v197_v14 = vld [vmem:[%s1015_s12 + $0x250] sm:$0xff]  ;;  %v200_v29 = vld [vmem:[%s1015_s12 + $0x268] sm:$0x1] }
  0x55   : > { %v505_v30 = vmax.f32 %v503_v57, %v504_v9  ;;  %v519_v31 = vmax.f32 %v517_v58, %v518_v10  ;;  %v527_v33 = vmax.f32 %v525_v61, %v526_v13  ;;  %v534_v34 = vrot.slane %v533_v15, 4  ;;  %v202_v58 = vld [vmem:[%s1015_s12 + $0x278] sm:$0x1]  ;;  %v204_v61 = vld [vmem:[%s1015_s12 + $0x288] sm:$0x1]  ;;  %v201_v13 = vld [vmem:[%s1015_s12 + $0x270] sm:$0xff] }
  0x56   : > { %v1184_v39 = vmax.f32 %v481_v50, %v482_v63  ;;  %v498_v40 = vrot.slane %v497_v19, 1  ;;  %v513_v42 = vmax.f32 %v511_v5, %v512_v21  ;;  %v540_v43 = vsel %vm251_vm0, %v196_v6, -inf }
  0x57   : > { %v506_v44 = vrot.slane %v505_v30, 1  ;;  %v520_v47 = vrot.slane %v519_v31, 2  ;;  %v528_v45 = vrot.slane %v527_v33, 2  ;;  %v535_v48 = vmax.f32 %v533_v15, %v534_v34  ;;  %v203_v15 = vld [vmem:[%s1015_s12 + $0x280] sm:$0xff]  ;;  %v208_v34 = vld [vmem:[%s1015_s12 + $0x2a8] sm:$0x1] }
  0x58   : > { %v1190_v52 = vmax.f32 %v489_v60, %v490_v18  ;;  %v1192_v56 = vmax.f32 %v497_v19, %v498_v40  ;;  %v541_v50 = vmax.f32 %v195_v23, %v540_v43  ;;  %v548_v57 = vsel %vm251_vm0, %v198_v26, -inf  ;;  %v206_v18 = vld [vmem:[%s1015_s12 + $0x298] sm:$0x1] }
  0x59   : > { %v514_v62 = vrot.slane %v513_v42, 1  ;;  %v521_v63 = vmax.f32 %v519_v31, %v520_v47  ;;  %v529_v3 = vmax.f32 %v527_v33, %v528_v45  ;;  %v536_v5 = vrot.slane %v535_v48, 2  ;;  %v205_v47 = vld [vmem:[%s1015_s12 + $0x290] sm:$0xff]  ;;  %v207_v45 = vld [vmem:[%s1015_s12 + $0x2a0] sm:$0xff] }
  0x5a   : > { %1472 = vst [vmem:[#allocation3_spill] sm:$0xff] %v1190_v52  ;;  %v1197_v6 = vmax.f32 %v505_v30, %v506_v44  ;;  %v542_v9 = vrot.slane %v541_v50, 4  ;;  %v549_v10 = vmax.f32 %v197_v14, %v548_v57  ;;  %v556_v60 = vsel %vm251_vm0, %v200_v29, -inf  ;;  %v210_v57 = vld [vmem:[%s1015_s12 + $0x2b8] sm:$0x1] }
  0x5b   : > { %1473 = vst [vmem:[#allocation4_spill] sm:$0xff] %v1192_v56  ;;  %v522_v19 = vrot.slane %v521_v63, 1  ;;  %v530_v21 = vrot.slane %v529_v3, 1  ;;  %v537_v23 = vmax.f32 %v535_v48, %v536_v5  ;;  %v557_v26 = vmax.f32 %v199_v51, %v556_v60 }
  0x5c   : > { %1474 = vst [vmem:[#allocation5_spill] sm:$0xff] %v1197_v6  ;;  %v543_v31 = vmax.f32 %v541_v50, %v542_v9  ;;  %v550_v33 = vrot.slane %v549_v10, 4  ;;  %v564_v30 = vsel %vm251_vm0, %v202_v58, -inf  ;;  %v572_v40 = vsel %vm251_vm0, %v204_v61, -inf  ;;  %v209_v61 = vld [vmem:[%s1015_s12 + $0x2b0] sm:$0xff] }
  0x5d   : > { %v1206_v43 = vmax.f32 %v513_v42, %v514_v62  ;;  %v1208_v14 = vmax.f32 %v521_v63, %v522_v19  ;;  %v1210_v29 = vmax.f32 %v529_v3, %v530_v21  ;;  %v558_v44 = vrot.slane %v557_v26, 4 }
  0x5e   : > { %v544_v48 = vrot.slane %v543_v31, 2  ;;  %v551_v51 = vmax.f32 %v549_v10, %v550_v33  ;;  %v565_v5 = vmax.f32 %v201_v13, %v564_v30  ;;  %v573_v50 = vmax.f32 %v203_v15, %v572_v40 }
  0x5f   : > { %v538_v9 = vrot.slane %v537_v23, 1  ;;  %v559_v60 = vmax.f32 %v557_v26, %v558_v44  ;;  %v580_v58 = vsel %vm251_vm0, %v206_v18, -inf  ;;  %v588_v42 = vsel %vm251_vm0, %v208_v34, -inf  ;;  %v212_v18 = vld [vmem:[%s1015_s12 + $0x2c8] sm:$0x1] }
  0x60   : > { %v545_v62 = vmax.f32 %v543_v31, %v544_v48  ;;  %v552_v63 = vrot.slane %v551_v51, 2  ;;  %v566_v3 = vrot.slane %v565_v5, 4  ;;  %v574_v19 = vrot.slane %v573_v50, 4 }
  0x61   : > { %v560_v21 = vrot.slane %v559_v60, 2  ;;  %v581_v6 = vmax.f32 %v205_v47, %v580_v58  ;;  %v589_v56 = vmax.f32 %v207_v45, %v588_v42  ;;  %v596_v10 = vsel %vm251_vm0, %v210_v57, -inf  ;;  %v211_v45 = vld [vmem:[%s1015_s12 + $0x2c0] sm:$0xff]  ;;  %v214_v42 = vld [vmem:[%s1015_s12 + $0x2d8] sm:$0x1] }
  0x62   : > { %v546_v13 = vrot.slane %v545_v62, 1  ;;  %v553_v15 = vmax.f32 %v551_v51, %v552_v63  ;;  %v567_v26 = vmax.f32 %v565_v5, %v566_v3  ;;  %v575_v33 = vmax.f32 %v573_v50, %v574_v19  ;;  %v213_v50 = vld [vmem:[%s1015_s12 + $0x2d0] sm:$0xff] }
  0x63   : > { %v561_v30 = vmax.f32 %v559_v60, %v560_v21  ;;  %v582_v34 = vrot.slane %v581_v6, 4  ;;  %v590_v40 = vrot.slane %v589_v56, 4  ;;  %v597_v31 = vmax.f32 %v209_v61, %v596_v10 }
  0x64   : > { %v1220_v44 = vmax.f32 %v537_v23, %v538_v9  ;;  %v554_v48 = vrot.slane %v553_v15, 1  ;;  %v568_v47 = vrot.slane %v567_v26, 2  ;;  %v576_v58 = vrot.slane %v575_v33, 2  ;;  %v216_v9 = vld [vmem:[%s1015_s12 + $0x2e8] sm:$0x1] }
  0x65   : > { %v1224_v11 = vmax.f32 %v545_v62, %v546_v13  ;;  %v583_v57 = vmax.f32 %v581_v6, %v582_v34  ;;  %v591_v51 = vmax.f32 %v589_v56, %v590_v40  ;;  %v598_v5 = vrot.slane %v597_v31, 4  ;;  %v215_v34 = vld [vmem:[%s1015_s12 + $0x2e0] sm:$0xff]  ;;  %v218_v40 = vld [vmem:[%s1015_s12 + $0x2f8] sm:$0x1] }
  0x66   : > { %1475 = vst [vmem:[#allocation6_spill] sm:$0xff] %v1220_v44  ;;  %v562_v60 = vrot.slane %v561_v30, 1  ;;  %v569_v63 = vmax.f32 %v567_v26, %v568_v47  ;;  %v577_v61 = vmax.f32 %v575_v33, %v576_v58  ;;  %v604_v23 = vsel %vm251_vm0, %v212_v18, -inf  ;;  %v220_v26 = vld [vmem:[%s1015_s12 + $0x308] sm:$0x1] }
  0x67   : > { %1476 = vst [vmem:[#allocation7_spill] sm:$0xff] %v1224_v11  ;;  %v1229_v3 = vmax.f32 %v553_v15, %v554_v48  ;;  %v584_v19 = vrot.slane %v583_v57, 2  ;;  %v592_v21 = vrot.slane %v591_v51, 2  ;;  %v599_v10 = vmax.f32 %v597_v31, %v598_v5 }
  0x68   : > { %v570_v62 = vrot.slane %v569_v63, 1  ;;  %v578_v56 = vrot.slane %v577_v61, 1  ;;  %v605_v6 = vmax.f32 %v211_v45, %v604_v23  ;;  %v612_v13 = vsel %vm251_vm0, %v214_v42, -inf  ;;  %v219_v45 = vld [vmem:[%s1015_s12 + $0x300] sm:$0xff] }
  0x69   : > { %1477 = vst [vmem:[#allocation8_spill] sm:$0xff] %v1229_v3  ;;  %v585_v33 = vmax.f32 %v583_v57, %v584_v19  ;;  %v593_v18 = vmax.f32 %v591_v51, %v592_v21  ;;  %v600_v47 = vrot.slane %v599_v10, 2  ;;  %v613_v15 = vmax.f32 %v213_v50, %v612_v13  ;;  %v217_v3 = vld [vmem:[%s1015_s12 + $0x2f0] sm:$0xff]  ;;  %v222_v57 = vld [vmem:[%s1015_s12 + $0x318] sm:$0x1] }
  0x6a   : > { %v1235_v48 = vmax.f32 %v561_v30, %v562_v60  ;;  %v1237_v58 = vmax.f32 %v569_v63, %v570_v62  ;;  %v606_v31 = vrot.slane %v605_v6, 4  ;;  %v620_v5 = vsel %vm251_vm0, %v216_v9, -inf  ;;  %v224_v51 = vld [vmem:[%s1015_s12 + $0x328] sm:$0x1]  ;;  %v221_v13 = vld [vmem:[%s1015_s12 + $0x310] sm:$0xff] }
  0x6b   : > { %v586_v42 = vrot.slane %v585_v33, 1  ;;  %v594_v23 = vrot.slane %v593_v18, 1  ;;  %v601_v11 = vmax.f32 %v599_v10, %v600_v47  ;;  %v614_v44 = vrot.slane %v613_v15, 4  ;;  %v226_v10 = vld [vmem:[%s1015_s12 + $0x338] sm:$0x1] }
  0x6c   : > { %1478 = vst [vmem:[#allocation9_spill] sm:$0xff] %v1235_v48  ;;  %v607_v19 = vmax.f32 %v605_v6, %v606_v31  ;;  %v621_v50 = vmax.f32 %v215_v34, %v620_v5  ;;  %v628_v30 = vsel %vm251_vm0, %v218_v40, -inf  ;;  %v636_v60 = vsel %vm251_vm0, %v220_v26, -inf }
  0x6d   : > { %1479 = vst [vmem:[#allocation10_spill] sm:$0xff] %v1237_v58  ;;  %v1246_v63 = vmax.f32 %v577_v61, %v578_v56  ;;  %v1248_v9 = vmax.f32 %v585_v33, %v586_v42  ;;  %v1250_v21 = vmax.f32 %v593_v18, %v594_v23  ;;  %v615_v62 = vmax.f32 %v613_v15, %v614_v44  ;;  %v223_v58 = vld [vmem:[%s1015_s12 + $0x320] sm:$0xff]  ;;  %v225_v56 = vld [vmem:[%s1015_s12 + $0x330] sm:$0xff] }
  0x6e   : > { %v608_v47 = vrot.slane %v607_v19, 2  ;;  %v622_v48 = vrot.slane %v621_v50, 4  ;;  %v629_v52 = vmax.f32 %v217_v3, %v628_v30  ;;  %v637_v6 = vmax.f32 %v219_v45, %v636_v60 }
  0x6f   : > { %1480 = vst [vmem:[#allocation11_spill] sm:$0xff] %v1248_v9  ;;  %v602_v34 = vrot.slane %v601_v11, 1  ;;  %v616_v31 = vrot.slane %v615_v62, 2  ;;  %v644_v40 = vsel %vm251_vm0, %v222_v57, -inf  ;;  %v652_v61 = vsel %vm251_vm0, %v224_v51, -inf }
  0x70   : > { %1481 = vst [vmem:[#allocation12_spill] sm:$0xff] %v1250_v21  ;;  %v609_v26 = vmax.f32 %v607_v19, %v608_v47  ;;  %v623_v33 = vmax.f32 %v621_v50, %v622_v48  ;;  %v630_v18 = vrot.slane %v629_v52, 4  ;;  %v638_v44 = vrot.slane %v637_v6, 4  ;;  %v228_v21 = vld [vmem:[%s1015_s12 + $0x348] sm:$0x1]  ;;  %v227_v19 = vld [vmem:[%s1015_s12 + $0x340] sm:$0xff] }
  0x71   : > { %v617_v15 = vmax.f32 %v615_v62, %v616_v31  ;;  %v645_v5 = vmax.f32 %v221_v13, %v644_v40  ;;  %v653_v42 = vmax.f32 %v223_v58, %v652_v61  ;;  %v660_v3 = vsel %vm251_vm0, %v226_v10, -inf  ;;  %v230_v47 = vld [vmem:[%s1015_s12 + $0x358] sm:$0x1] }
  0x72   : > { %v610_v45 = vrot.slane %v609_v26, 1  ;;  %v624_v23 = vrot.slane %v623_v33, 2  ;;  %v631_v30 = vmax.f32 %v629_v52, %v630_v18  ;;  %v639_v60 = vmax.f32 %v637_v6, %v638_v44  ;;  %v232_v18 = vld [vmem:[%s1015_s12 + $0x368] sm:$0x1] }
  0x73   : > { %v1260_v57 = vmax.f32 %v601_v11, %v602_v34  ;;  %v646_v51 = vrot.slane %v645_v5, 4  ;;  %v654_v9 = vrot.slane %v653_v42, 4  ;;  %v661_v48 = vmax.f32 %v225_v56, %v660_v3  ;;  %v229_v56 = vld [vmem:[%s1015_s12 + $0x350] sm:$0xff] }
  0x74   : > { %v618_v50 = vrot.slane %v617_v15, 1  ;;  %v625_v62 = vmax.f32 %v623_v33, %v624_v23  ;;  %v632_v13 = vrot.slane %v631_v30, 2  ;;  %v640_v58 = vrot.slane %v639_v60, 2 }
  0x75   : > { %1482 = vst [vmem:[#allocation13_spill] sm:$0xff] %v1260_v57  ;;  %v1264_v10 = vmax.f32 %v609_v26, %v610_v45  ;;  %v647_v31 = vmax.f32 %v645_v5, %v646_v51  ;;  %v655_v52 = vmax.f32 %v653_v42, %v654_v9  ;;  %v662_v6 = vrot.slane %v661_v48, 4  ;;  %v231_v57 = vld [vmem:[%s1015_s12 + $0x360] sm:$0xff]  ;;  %v234_v45 = vld [vmem:[%s1015_s12 + $0x378] sm:$0x1] }
  0x76   : > { %v626_v11 = vrot.slane %v625_v62, 1  ;;  %v633_v34 = vmax.f32 %v631_v30, %v632_v13  ;;  %v641_v40 = vmax.f32 %v639_v60, %v640_v58  ;;  %v668_v61 = vsel %vm251_vm0, %v228_v21, -inf  ;;  %v236_v30 = vld [vmem:[%s1015_s12 + $0x388] sm:$0x1] }
  0x77   : > { %1483 = vst [vmem:[#allocation14_spill] sm:$0xff] %v1264_v10  ;;  %v648_v44 = vrot.slane %v647_v31, 2  ;;  %v656_v33 = vrot.slane %v655_v52, 2  ;;  %v663_v3 = vmax.f32 %v661_v48, %v662_v6  ;;  %v669_v23 = vmax.f32 %v227_v19, %v668_v61  ;;  %v235_v6 = vld [vmem:[%s1015_s12 + $0x380] sm:$0xff]  ;;  %v238_v61 = vld [vmem:[%s1015_s12 + $0x398] sm:$0x1] }
  0x78   : > { %v1270_v26 = vmax.f32 %v617_v15, %v618_v50  ;;  %v634_v9 = vrot.slane %v633_v34, 1  ;;  %v642_v5 = vrot.slane %v641_v40, 1  ;;  %v676_v42 = vsel %vm251_vm0, %v230_v47, -inf  ;;  %v233_v50 = vld [vmem:[%s1015_s12 + $0x370] sm:$0xff] }
  0x79   : > { %v649_v21 = vmax.f32 %v647_v31, %v648_v44  ;;  %v657_v60 = vmax.f32 %v655_v52, %v656_v33  ;;  %v664_v51 = vrot.slane %v663_v3, 2  ;;  %v670_v13 = vrot.slane %v669_v23, 4  ;;  %v240_v52 = vld [vmem:[%s1015_s12 + $0x3a8] sm:$0x1] }
  0x7a   : > { %1484 = vst [vmem:[#allocation15_spill] sm:$0xff] %v1270_v26  ;;  %v1275_v58 = vmax.f32 %v625_v62, %v626_v11  ;;  %v1277_v48 = vmax.f32 %v633_v34, %v634_v9  ;;  %v677_v19 = vmax.f32 %v229_v56, %v676_v42  ;;  %v684_v15 = vsel %vm251_vm0, %v232_v18, -inf  ;;  %v237_v42 = vld [vmem:[%s1015_s12 + $0x390] sm:$0xff] }
  0x7b   : > { %v650_v47 = vrot.slane %v649_v21, 1  ;;  %v658_v26 = vrot.slane %v657_v60, 1  ;;  %v665_v10 = vmax.f32 %v663_v3, %v664_v51  ;;  %v671_v31 = vmax.f32 %v669_v23, %v670_v13 }
  0x7c   : > { %1485 = vst [vmem:[#allocation16_spill] sm:$0xff] %v1275_v58  ;;  %v678_v44 = vrot.slane %v677_v19, 4  ;;  %v685_v33 = vmax.f32 %v231_v57, %v684_v15  ;;  %v692_v62 = vsel %vm251_vm0, %v234_v45, -inf  ;;  %v700_v11 = vsel %vm251_vm0, %v236_v30, -inf  ;;  %v242_v58 = vld [vmem:[%s1015_s12 + $0x3b8] sm:$0x1] }
  0x7d   : > { %1486 = vst [vmem:[#allocation17_spill] sm:$0xff] %v1277_v48  ;;  %v1286_v34 = vmax.f32 %v641_v40, %v642_v5  ;;  %v1288_v56 = vmax.f32 %v649_v21, %v650_v47  ;;  %v1290_v18 = vmax.f32 %v657_v60, %v658_v26  ;;  %v672_v9 = vrot.slane %v671_v31, 2  ;;  %v239_v48 = vld [vmem:[%s1015_s12 + $0x3a0] sm:$0xff]  ;;  %v241_v5 = vld [vmem:[%s1015_s12 + $0x3b0] sm:$0xff] }
  0x7e   : > { %v679_v3 = vmax.f32 %v677_v19, %v678_v44  ;;  %v686_v23 = vrot.slane %v685_v33, 4  ;;  %v693_v51 = vmax.f32 %v233_v50, %v692_v62  ;;  %v701_v57 = vmax.f32 %v235_v6, %v700_v11  ;;  %v244_v50 = vld [vmem:[%s1015_s12 + $0x3c8] sm:$0x1] }
  0x7f   : > { %1487 = vst [vmem:[#allocation18_spill] sm:$0xff] %v1288_v56  ;;  %v666_v13 = vrot.slane %v665_v10, 1  ;;  %v673_v45 = vmax.f32 %v671_v31, %v672_v9  ;;  %v708_v30 = vsel %vm251_vm0, %v238_v61, -inf  ;;  %v716_v40 = vsel %vm251_vm0, %v240_v52, -inf  ;;  %v243_v9 = vld [vmem:[%s1015_s12 + $0x3c0] sm:$0xff] }
  0x80   : > { %1488 = vst [vmem:[#allocation19_spill] sm:$0xff] %v1290_v18  ;;  %v680_v21 = vrot.slane %v679_v3, 2  ;;  %v687_v15 = vmax.f32 %v685_v33, %v686_v23  ;;  %v694_v26 = vrot.slane %v693_v51, 4  ;;  %v702_v60 = vrot.slane %v701_v57, 4 }
  0x81   : > { %v674_v47 = vrot.slane %v673_v45, 1  ;;  %v709_v18 = vmax.f32 %v237_v42, %v708_v30  ;;  %v717_v56 = vmax.f32 %v239_v48, %v716_v40  ;;  %v724_v19 = vsel %vm251_vm0, %v242_v58, -inf  ;;  %v246_v58 = vld [vmem:[%s1015_s12 + $0x3d8] sm:$0x1] }
  0x82   : > { %v681_v6 = vmax.f32 %v679_v3, %v680_v21  ;;  %v688_v31 = vrot.slane %v687_v15, 2  ;;  %v695_v44 = vmax.f32 %v693_v51, %v694_v26  ;;  %v703_v61 = vmax.f32 %v701_v57, %v702_v60  ;;  %v248_v26 = vld [vmem:[%s1015_s12 + $0x3e8] sm:$0x1] }
  0x83   : > { %v1300_v62 = vmax.f32 %v665_v10, %v666_v13  ;;  %v710_v52 = vrot.slane %v709_v18, 4  ;;  %v718_v11 = vrot.slane %v717_v56, 4  ;;  %v725_v33 = vmax.f32 %v241_v5, %v724_v19 }
  0x84   : > { %v682_v23 = vrot.slane %v681_v6, 1  ;;  %v689_v42 = vmax.f32 %v687_v15, %v688_v31  ;;  %v696_v48 = vrot.slane %v695_v44, 2  ;;  %v704_v30 = vrot.slane %v703_v61, 2  ;;  %v245_v15 = vld [vmem:[%s1015_s12 + $0x3d0] sm:$0xff] }
  0x85   : > { %1489 = vst [vmem:[#allocation20_spill] sm:$0xff] %v1300_v62  ;;  %v711_v3 = vmax.f32 %v709_v18, %v710_v52  ;;  %v719_v51 = vmax.f32 %v717_v56, %v718_v11  ;;  %v726_v57 = vrot.slane %v725_v33, 4  ;;  %v732_v10 = vsel %vm251_vm0, %v244_v50, -inf }
  0x86   : > { %v1309_v13 = vmax.f32 %v673_v45, %v674_v47  ;;  %v690_v40 = vrot.slane %v689_v42, 1  ;;  %v697_v5 = vmax.f32 %v695_v44, %v696_v48  ;;  %v705_v21 = vmax.f32 %v703_v61, %v704_v30  ;;  %v247_v45 = vld [vmem:[%s1015_s12 + $0x3e0] sm:$0xff]  ;;  %v250_v47 = vld [vmem:[%s1015_s12 + $0x3f8] sm:$0x1] }
  0x87   : > { %v712_v60 = vrot.slane %v711_v3, 2  ;;  %v720_v19 = vrot.slane %v719_v51, 2  ;;  %v727_v31 = vmax.f32 %v725_v33, %v726_v57  ;;  %v733_v62 = vmax.f32 %v243_v9, %v732_v10 }
  0x88   : > { %1490 = vst [vmem:[#allocation21_spill] sm:$0xff] %v1309_v13  ;;  %v1314_v18 = vmax.f32 %v681_v6, %v682_v23  ;;  %v698_v56 = vrot.slane %v697_v5, 1  ;;  %v706_v52 = vrot.slane %v705_v21, 1  ;;  %v740_v50 = vsel %vm251_vm0, %v246_v58, -inf  ;;  %v249_v23 = vld [vmem:[%s1015_s12 + $0x3f0] sm:$0xff] }
  0x89   : > { %v713_v44 = vmax.f32 %v711_v3, %v712_v60  ;;  %v721_v61 = vmax.f32 %v719_v51, %v720_v19  ;;  %v728_v11 = vrot.slane %v727_v31, 2  ;;  %v734_v48 = vrot.slane %v733_v62, 4 }
  0x8a   : > { %1491 = vst [vmem:[#allocation22_spill] sm:$0xff] %v1314_v18  ;;  %v1319_v30 = vmax.f32 %v689_v42, %v690_v40  ;;  %v1321_v33 = vmax.f32 %v697_v5, %v698_v56  ;;  %v741_v9 = vmax.f32 %v245_v15, %v740_v50  ;;  %v748_v6 = vsel %vm251_vm0, %v248_v26, -inf }
  0x8b   : > { %v714_v57 = vrot.slane %v713_v44, 1  ;;  %v722_v10 = vrot.slane %v721_v61, 1  ;;  %v729_v18 = vmax.f32 %v727_v31, %v728_v11  ;;  %v735_v58 = vmax.f32 %v733_v62, %v734_v48 }
  0x8c   : > { %v742_v13 = vrot.slane %v741_v9, 4  ;;  %v749_v3 = vmax.f32 %v247_v45, %v748_v6  ;;  %v756_v51 = vsel %vm251_vm0, %v250_v47, -inf  ;;  %v1331_v42 = vmax.f32 %v705_v21, %v706_v52 }
  0x8d   : > { %v1333_v40 = vmax.f32 %v713_v44, %v714_v57  ;;  %v1335_v5 = vmax.f32 %v721_v61, %v722_v10  ;;  %v736_v15 = vrot.slane %v735_v58, 2  ;;  %v757_v19 = vmax.f32 %v249_v23, %v756_v51  ;;  %v1493_v51 = vld [vmem:[#allocation6_spill] sm:$0xff] }
  0x8e   : > { %v743_v26 = vmax.f32 %v741_v9, %v742_v13  ;;  %v750_v60 = vrot.slane %v749_v3, 4  ;;  %v829_v62 = vsel %vm828_vm1, %v1058_v37, %v1055_v32  ;;  %v730_v31 = vrot.slane %v729_v18, 1 }
  0x8f   : > { %v737_v56 = vmax.f32 %v735_v58, %v736_v15  ;;  %v758_v52 = vrot.slane %v757_v19, 4  ;;  %v831_v45 = vsel %vm830_vm2, %v1060_v38, %v829_v62  ;;  %v842_v23 = vsel %vm828_vm1, %v1087_v7, %v1081_v2  ;;  %v1494_v15 = vld [vmem:[#allocation2_spill] sm:$0xff]  ;;  %v1498_v62 = vld [vmem:[#allocation5_spill] sm:$0xff] }
  0x90   : > { %v744_v50 = vrot.slane %v743_v26, 2  ;;  %v751_v21 = vmax.f32 %v749_v3, %v750_v60  ;;  %v833_v13 = vsel %vm832_vm3, %v1067_v53, %v831_v45  ;;  %v731_v11 = vmax.f32 %v729_v18, %v730_v31  ;;  %v1492_v3 = vld [vmem:[#allocation3_spill] sm:$0xff]  ;;  %v1501_v45 = vld [vmem:[#allocation18_spill] sm:$0xff] }
  0x91   : > { %v738_v47 = vrot.slane %v737_v56, 1  ;;  %v759_v32 = vmax.f32 %v757_v19, %v758_v52  ;;  %v835_v37 = vsel %vm834_vm4, %v1069_v54, %v833_v13  ;;  %v849_v18 = vsel %vm828_vm1, %v1127_v35, %v1121_v28  ;;  %v1502_v13 = vld [vmem:[#allocation9_spill] sm:$0xff] }
  0x92   : > { %v745_v44 = vmax.f32 %v743_v26, %v744_v50  ;;  %v752_v61 = vrot.slane %v751_v21, 2  ;;  %v837_v38 = vsel %vm836_vm5, %v1071_v55, %v835_v37  ;;  %v856_v55 = vsel %vm828_vm1, %v1167_v24, %v1162_v12 }
  0x93   : > { %v760_v9 = vrot.slane %v759_v32, 2  ;;  %v839_v6 = vsel %vm838_vm6, %v1077_v0, %v837_v38  ;;  %v739_v57 = vmax.f32 %v737_v56, %v738_v47  ;;  %v843_v0 = vsel %vm830_vm2, %v1089_v8, %v842_v23  ;;  %v1499_v56 = vld [vmem:[#allocation8_spill] sm:$0xff] }
  0x94   : > { %v746_v53 = vrot.slane %v745_v44, 1  ;;  %v753_v48 = vmax.f32 %v751_v21, %v752_v61  ;;  %v841_v54 = vsel %vm840_vm7, %v1079_v1, %v839_v6  ;;  %v844_v1 = vsel %vm832_vm3, %v1100_v46, %v843_v0  ;;  %v1500_v21 = vld [vmem:[#allocation12_spill] sm:$0xff] }
  0x95   : > { %v761_v58 = vmax.f32 %v759_v32, %v760_v9  ;;  %899 = vst [vmem:[%s1350_s17] sm:$0xff] %v841_v54  ;;  %v850_v2 = vsel %vm830_vm2, %v1129_v41, %v849_v18  ;;  %v857_v7 = vsel %vm830_vm2, %v1169_v25, %v856_v55  ;;  %v863_v28 = vsel %vm828_vm1, %v1208_v14, %v1206_v43  ;;  %v1504_v32 = vld [vmem:[#allocation19_spill] sm:$0xff]  ;;  %v1506_v9 = vld [vmem:[#allocation14_spill] sm:$0xff]  ;;  %v1507_v6 = vld [vmem:[#allocation20_spill] sm:$0xff] }
  0x96   : > { %v754_v10 = vrot.slane %v753_v48, 1  ;;  %v747_v35 = vmax.f32 %v745_v44, %v746_v53  ;;  %v845_v24 = vsel %vm834_vm4, %v1104_v59, %v844_v1  ;;  %v851_v8 = vsel %vm832_vm3, %v1140_v20, %v850_v2  ;;  %v1505_v53 = vld [vmem:[#allocation10_spill] sm:$0xff]  ;;  %v1508_v55 = vld [vmem:[#allocation15_spill] sm:$0xff]  ;;  %v1510_v1 = vld [vmem:[#allocation16_spill] sm:$0xff] }
  0x97   : > { %v846_v46 = vsel %vm836_vm5, %v1112_v16, %v845_v24  ;;  %v852_v41 = vsel %vm834_vm4, %v1144_v36, %v851_v8  ;;  %v858_v25 = vsel %vm832_vm3, %v1180_v17, %v857_v7  ;;  %v864_v43 = vsel %vm830_vm2, %v1210_v29, %v863_v28  ;;  %v1511_v7 = vld [vmem:[#allocation22_spill] sm:$0xff]  ;;  %v1512_v24 = vld [vmem:[#allocation17_spill] sm:$0xff] }
  0x98   : > { %v755_v12 = vmax.f32 %v753_v48, %v754_v10  ;;  %v762_v14 = vrot.slane %v761_v58, 1  ;;  %v847_v59 = vsel %vm838_vm6, %v1116_v22, %v846_v46  ;;  %v853_v20 = vsel %vm836_vm5, %v1149_v49, %v852_v41  ;;  %v1495_v49 = vld [vmem:[#allocation4_spill] sm:$0xff] }
  0x99   : > { %v859_v16 = vsel %vm834_vm4, %v1184_v39, %v858_v25  ;;  %v848_v36 = vsel %vm840_vm7, %v1119_v27, %v847_v59  ;;  %v854_v17 = vsel %vm838_vm6, %v1156_v4, %v853_v20  ;;  %v865_v22 = vsel %vm832_vm3, %v1493_v51, %v864_v43  ;;  %v1496_v39 = vld [vmem:[#allocation7_spill] sm:$0xff] }
  0x9a   : > { %v860_v29 = vsel %vm836_vm5, %v1492_v3, %v859_v16  ;;  %v855_v26 = vsel %vm840_vm7, %v1494_v15, %v854_v17  ;;  %v866_v19 = vsel %vm834_vm4, %v1496_v39, %v865_v22  ;;  %v1497_v27 = vld [vmem:[#allocation11_spill] sm:$0xff]  ;;  %900 = vst [vmem:[%s1350_s17 + $0x8] sm:$0xff] %v848_v36  ;;  %v877_v47 = vsel %vm828_vm1, %v1501_v45, %v1286_v34 }
  0x9b   : > { %v861_v60 = vsel %vm838_vm6, %v1495_v49, %v860_v29  ;;  %v870_v4 = vsel %vm828_vm1, %v1497_v27, %v1246_v63  ;;  %v867_v50 = vsel %vm836_vm5, %v1499_v56, %v866_v19  ;;  %901 = vst [vmem:[%s1350_s17 + $0x10] sm:$0xff] %v855_v26  ;;  %v1503_v63 = vld [vmem:[#allocation13_spill] sm:$0xff]  ;;  %v878_v37 = vsel %vm830_vm2, %v1504_v32, %v877_v47 }
  0x9c   : > { %v862_v31 = vsel %vm840_vm7, %v1498_v62, %v861_v60  ;;  %v871_v52 = vsel %vm830_vm2, %v1500_v21, %v870_v4  ;;  %v868_v44 = vsel %vm838_vm6, %v1502_v13, %v867_v50  ;;  %v884_v38 = vsel %vm828_vm1, %v1333_v40, %v1331_v42  ;;  %v1509_v40 = vld [vmem:[#allocation21_spill] sm:$0xff] }
  0x9d   : > { %v872_v61 = vsel %vm832_vm3, %v1503_v63, %v871_v52  ;;  %902 = vst [vmem:[%s1350_s17 + $0x18] sm:$0xff] %v862_v31  ;;  %v869_v48 = vsel %vm840_vm7, %v1505_v53, %v868_v44  ;;  %v879_v54 = vsel %vm832_vm3, %v1507_v6, %v878_v37  ;;  %v885_v23 = vsel %vm830_vm2, %v1335_v5, %v884_v38 }
  0x9e   : > { %v873_v34 = vsel %vm834_vm4, %v1506_v9, %v872_v61  ;;  %v763_v18 = vmax.f32 %v761_v58, %v762_v14  ;;  %v880_v10 = vsel %vm834_vm4, %v1509_v40, %v879_v54  ;;  %v886_v0 = vsel %vm832_vm3, %v731_v11, %v885_v23  ;;  %903 = vst [vmem:[%s1350_s17 + $0x20] sm:$0xff] %v869_v48 }
  0x9f   : > { %v874_v42 = vsel %vm836_vm5, %v1508_v55, %v873_v34  ;;  %v881_v28 = vsel %vm836_vm5, %v1511_v7, %v880_v10  ;;  %v887_v5 = vsel %vm834_vm4, %v739_v57, %v886_v0 }
  0xa0   : > { %v875_v2 = vsel %vm838_vm6, %v1510_v1, %v874_v42  ;;  %v882_v8 = vsel %vm838_vm6, %v1319_v30, %v881_v28  ;;  %v888_v46 = vsel %vm836_vm5, %v747_v35, %v887_v5 }
  0xa1   : > { %v876_v58 = vsel %vm840_vm7, %v1512_v24, %v875_v2  ;;  %v883_v11 = vsel %vm840_vm7, %v1321_v33, %v882_v8  ;;  %v889_v41 = vsel %vm838_vm6, %v755_v12, %v888_v46 }
  0xa2   : > { %904 = vst [vmem:[%s1350_s17 + $0x28] sm:$0xff] %v876_v58  ;;  %v890_v25 = vsel %vm840_vm7, %v763_v18, %v889_v41 }
  0xa3   : > { %905 = vst [vmem:[%s1350_s17 + $0x30] sm:$0xff] %v883_v11 }
  0xa4   : > { %906 = vst [vmem:[%s1350_s17 + $0x38] sm:$0xff] %v890_v25 }
  0xa5 PF: > { %s11_s6 = sadd.s32 1, %s990_s6  }
  0xa6   : > { %p8_p5 = scmp.ge.s32.totalorder %s11_s6, 4  }
  0xa8   :  { %10 = sbr.rel (!%p8_p5) target bundleno = 1 (0x1), region = 54 }

// kernel: encoder_cnn_forward.10
= control target key start
LH: loop header
LB: loop body
LE: loop exit
PB: predicated region body
PF: predicated region fallthrough
CT: control target
= control target key end

     0   :  { %s626_s1 = inlined_call_operand.vmem [shape: bf16[128,128], index: 1, kind: input, shape index: {}]   ;;  %s627_s2 = inlined_call_operand.vmem [shape: f32[1,128], index: 2, kind: input, shape index: {}]   ;;  %s628_s3 = inlined_call_operand.vmem [shape: f32[1,128], index: 3, kind: input, shape index: {}]   ;;  %s629_s0 = inlined_call_operand.vmem [shape: bf16[128,128], index: 0, kind: input, shape index: {}]   ;;  %s630_s4 = inlined_call_operand.vmem [shape: f32[128,128], index: 4, kind: output, shape index: {}]  }
   0x1   :  { %v436_v0 = vld [vmem:[%s626_s1 + $0x38] sm:$0xff]  ;;  %v435_v1 = vld [vmem:[%s626_s1 + $0x30] sm:$0xff]  ;;  %v434_v2 = vld [vmem:[%s626_s1 + $0x28] sm:$0xff] }
   0x2   :  { %181 = vmatpush.bf16.msra.mxu0 %v436_v0  ;;  %437 = vmatpush.bf16.msra.mxu1 %v436_v0  ;;  %v433_v3 = vld [vmem:[%s626_s1 + $0x20] sm:$0xff]  ;;  %v432_v4 = vld [vmem:[%s626_s1 + $0x18] sm:$0xff]  ;;  %v431_v5 = vld [vmem:[%s626_s1 + $0x10] sm:$0xff] }
   0x3   :  { %438 = vmatpush.bf16.msra.mxu2 %v436_v0  ;;  %439 = vmatpush.bf16.msra.mxu3 %v436_v0  ;;  %v430_v6 = vld [vmem:[%s626_s1 + $0x8] sm:$0xff]  ;;  %v429_v7 = vld [vmem:[%s626_s1] sm:$0xff]  ;;  %v423_v9 = vld [vmem:[%s629_s0 + $0x10] sm:$0xff] }
   0x4   :  { %v421_v8 = vld [vmem:[%s629_s0] sm:$0xff]  ;;  %v427_v11 = vld [vmem:[%s629_s0 + $0x30] sm:$0xff]  ;;  %v422_v12 = vld [vmem:[%s629_s0 + $0x8] sm:$0xff] }
   0x5   :  { %v425_v10 = vld [vmem:[%s629_s0 + $0x20] sm:$0xff]  ;;  %v424_v13 = vld [vmem:[%s629_s0 + $0x18] sm:$0xff]  ;;  %v426_v14 = vld [vmem:[%s629_s0 + $0x28] sm:$0xff] }
   0x6   :  { %182 = vmatpush.bf16.msra.mxu0 %v435_v1  ;;  %440 = vmatpush.bf16.msra.mxu1 %v435_v1  ;;  %v428_v15 = vld [vmem:[%s629_s0 + $0x38] sm:$0xff]  ;;  %v539_v16 = vld [vmem:[%s627_s2] ss:$0 sm:$0xff] }
   0x7   :  { %441 = vmatpush.bf16.msra.mxu2 %v435_v1  ;;  %442 = vmatpush.bf16.msra.mxu3 %v435_v1  ;;  %v544_v17 = vld [vmem:[%s628_s3] ss:$0 sm:$0xff] }
   0xa   :  { %183 = vmatpush.bf16.msra.mxu0 %v434_v2  ;;  %443 = vmatpush.bf16.msra.mxu1 %v434_v2 }
   0xb   :  { %444 = vmatpush.bf16.msra.mxu2 %v434_v2  ;;  %445 = vmatpush.bf16.msra.mxu3 %v434_v2 }
   0xe   :  { %184 = vmatpush.bf16.msra.mxu0 %v433_v3  ;;  %446 = vmatpush.bf16.msra.mxu1 %v433_v3 }
   0xf   :  { %447 = vmatpush.bf16.msra.mxu2 %v433_v3  ;;  %448 = vmatpush.bf16.msra.mxu3 %v433_v3 }
  0x12   :  { %185 = vmatpush.bf16.msra.mxu0 %v432_v4  ;;  %449 = vmatpush.bf16.msra.mxu1 %v432_v4 }
  0x13   :  { %450 = vmatpush.bf16.msra.mxu2 %v432_v4  ;;  %451 = vmatpush.bf16.msra.mxu3 %v432_v4 }
  0x16   :  { %186 = vmatpush.bf16.msra.mxu0 %v431_v5  ;;  %452 = vmatpush.bf16.msra.mxu1 %v431_v5 }
  0x17   :  { %453 = vmatpush.bf16.msra.mxu2 %v431_v5  ;;  %454 = vmatpush.bf16.msra.mxu3 %v431_v5 }
  0x1a   :  { %187 = vmatpush.bf16.msra.mxu0 %v430_v6  ;;  %455 = vmatpush.bf16.msra.mxu1 %v430_v6 }
  0x1b   :  { %456 = vmatpush.bf16.msra.mxu2 %v430_v6  ;;  %457 = vmatpush.bf16.msra.mxu3 %v430_v6 }
  0x1e   :  { %188 = vmatpush.bf16.msra.mxu0 %v429_v7  ;;  %458 = vmatpush.bf16.msra.mxu1 %v429_v7 }
  0x1f   :  { %459 = vmatpush.bf16.msra.mxu2 %v429_v7  ;;  %460 = vmatpush.bf16.msra.mxu3 %v429_v7 }
  0x21   :  { %189 = vmatmul.bf16.vlgmr.msra.gmra.mxu0 %v421_v8  ;;  %199 = vmatmul.bf16.vlgmr.msra.gmra.mxu1 %v423_v9 }
  0x22   :  { %209 = vmatmul.bf16.vlgmr.msra.gmra.mxu2 %v425_v10  ;;  %219 = vmatmul.bf16.vlgmr.msra.gmra.mxu3 %v427_v11 }
  0x31   :  { %194 = vmatmul.bf16.gmra.mxu0 %v422_v12  ;;  %204 = vmatmul.bf16.gmra.mxu1 %v424_v13 }
  0x32   :  { %214 = vmatmul.bf16.gmra.mxu2 %v426_v14  ;;  %224 = vmatmul.bf16.gmra.mxu3 %v428_v15 }
  0x9e   :  { %v190_v18 = vpop.f32.mrf.mxu0  ;;  %v200_v19 = vpop.f32.mrf.mxu1 }
  0x9f   :  { %v285_v20 = vmul.f32 %v539_v16, %v190_v18  ;;  %v289_v21 = vmul.f32 %v539_v16, %v200_v19 }
  0xa1   :  { %v305_v22 = vadd.f32 %v544_v17, %v285_v20  ;;  %v309_v23 = vadd.f32 %v544_v17, %v289_v21 }
  0xa3   :  { %v321_v24 = vmax.f32 %v305_v22, 0.0  ;;  %v325_v25 = vmax.f32 %v309_v23, 0.0 }
  0xa5   :  { %337 = vst [vmem:[%s630_s4] sm:$0xff] %v321_v24  ;;  %v210_v26 = vpop.f32.mrf.mxu2  ;;  %v220_v27 = vpop.f32.mrf.mxu3 }
  0xa6   :  { %341 = vst [vmem:[%s630_s4 + $0x20] sm:$0xff] %v325_v25  ;;  %v293_v28 = vmul.f32 %v539_v16, %v210_v26  ;;  %v297_v29 = vmul.f32 %v539_v16, %v220_v27  ;;  %v192_v30 = vpop.f32.mrf.mxu0  ;;  %v202_v31 = vpop.f32.mrf.mxu1 }
  0xa7   :  { %v286_v32 = vmul.f32 %v539_v16, %v192_v30  ;;  %v290_v33 = vmul.f32 %v539_v16, %v202_v31 }
  0xa8   :  { %v313_v34 = vadd.f32 %v544_v17, %v293_v28  ;;  %v317_v35 = vadd.f32 %v544_v17, %v297_v29 }
  0xa9   :  { %v306_v36 = vadd.f32 %v544_v17, %v286_v32  ;;  %v310_v37 = vadd.f32 %v544_v17, %v290_v33 }
  0xaa   :  { %v329_v38 = vmax.f32 %v313_v34, 0.0  ;;  %v333_v39 = vmax.f32 %v317_v35, 0.0 }
  0xab   :  { %v322_v40 = vmax.f32 %v306_v36, 0.0  ;;  %v326_v41 = vmax.f32 %v310_v37, 0.0 }
  0xac   :  { %345 = vst [vmem:[%s630_s4 + $0x40] sm:$0xff] %v329_v38 }
  0xad   :  { %349 = vst [vmem:[%s630_s4 + $0x60] sm:$0xff] %v333_v39  ;;  %v212_v42 = vpop.f32.mrf.mxu2  ;;  %v222_v43 = vpop.f32.mrf.mxu3 }
  0xae   :  { %338 = vst [vmem:[%s630_s4 + $0x8] sm:$0xff] %v322_v40  ;;  %v294_v44 = vmul.f32 %v539_v16, %v212_v42  ;;  %v298_v45 = vmul.f32 %v539_v16, %v222_v43  ;;  %v195_v46 = vpop.f32.mrf.mxu0  ;;  %v205_v47 = vpop.f32.mrf.mxu1 }
  0xaf   :  { %342 = vst [vmem:[%s630_s4 + $0x28] sm:$0xff] %v326_v41  ;;  %v287_v48 = vmul.f32 %v539_v16, %v195_v46  ;;  %v291_v49 = vmul.f32 %v539_v16, %v205_v47 }
  0xb0   :  { %v314_v50 = vadd.f32 %v544_v17, %v294_v44  ;;  %v318_v51 = vadd.f32 %v544_v17, %v298_v45 }
  0xb1   :  { %v307_v52 = vadd.f32 %v544_v17, %v287_v48  ;;  %v311_v53 = vadd.f32 %v544_v17, %v291_v49 }
  0xb2   :  { %v330_v54 = vmax.f32 %v314_v50, 0.0  ;;  %v334_v55 = vmax.f32 %v318_v51, 0.0 }
  0xb3   :  { %v323_v56 = vmax.f32 %v307_v52, 0.0  ;;  %v327_v57 = vmax.f32 %v311_v53, 0.0 }
  0xb4   :  { %346 = vst [vmem:[%s630_s4 + $0x48] sm:$0xff] %v330_v54 }
  0xb5   :  { %350 = vst [vmem:[%s630_s4 + $0x68] sm:$0xff] %v334_v55  ;;  %v215_v58 = vpop.f32.mrf.mxu2  ;;  %v225_v59 = vpop.f32.mrf.mxu3 }
  0xb6   :  { %339 = vst [vmem:[%s630_s4 + $0x10] sm:$0xff] %v323_v56  ;;  %v295_v60 = vmul.f32 %v539_v16, %v215_v58  ;;  %v299_v61 = vmul.f32 %v539_v16, %v225_v59  ;;  %v197_v62 = vpop.f32.mrf.mxu0  ;;  %v207_v63 = vpop.f32.mrf.mxu1 }
  0xb7   :  { %343 = vst [vmem:[%s630_s4 + $0x30] sm:$0xff] %v327_v57  ;;  %v288_v0 = vmul.f32 %v539_v16, %v197_v62  ;;  %v292_v1 = vmul.f32 %v539_v16, %v207_v63 }
  0xb8   :  { %v315_v2 = vadd.f32 %v544_v17, %v295_v60  ;;  %v319_v3 = vadd.f32 %v544_v17, %v299_v61 }
  0xb9   :  { %v308_v4 = vadd.f32 %v544_v17, %v288_v0  ;;  %v312_v5 = vadd.f32 %v544_v17, %v292_v1 }
  0xba   :  { %v331_v6 = vmax.f32 %v315_v2, 0.0  ;;  %v335_v7 = vmax.f32 %v319_v3, 0.0 }
  0xbb   :  { %v324_v8 = vmax.f32 %v308_v4, 0.0  ;;  %v328_v9 = vmax.f32 %v312_v5, 0.0 }
  0xbc   :  { %347 = vst [vmem:[%s630_s4 + $0x50] sm:$0xff] %v331_v6 }
  0xbd   :  { %351 = vst [vmem:[%s630_s4 + $0x70] sm:$0xff] %v335_v7  ;;  %v217_v10 = vpop.f32.mrf.mxu2  ;;  %v227_v11 = vpop.f32.mrf.mxu3 }
  0xbe   :  { %340 = vst [vmem:[%s630_s4 + $0x18] sm:$0xff] %v324_v8  ;;  %v296_v12 = vmul.f32 %v539_v16, %v217_v10  ;;  %v300_v13 = vmul.f32 %v539_v16, %v227_v11 }
  0xbf   :  { %344 = vst [vmem:[%s630_s4 + $0x38] sm:$0xff] %v328_v9 }
  0xc0   :  { %v316_v14 = vadd.f32 %v544_v17, %v296_v12  ;;  %v320_v15 = vadd.f32 %v544_v17, %v300_v13 }
  0xc2   :  { %v332_v18 = vmax.f32 %v316_v14, 0.0  ;;  %v336_v19 = vmax.f32 %v320_v15, 0.0 }
  0xc4   :  { %348 = vst [vmem:[%s630_s4 + $0x58] sm:$0xff] %v332_v18 }
  0xc5   :  { %352 = vst [vmem:[%s630_s4 + $0x78] sm:$0xff] %v336_v19 }

// kernel: encoder_cnn_forward.12
= control target key start
LH: loop header
LB: loop body
LE: loop exit
PB: predicated region body
PF: predicated region fallthrough
CT: control target
= control target key end

     0   :  { %s592_s1 = inlined_call_operand.vmem [shape: bf16[128,128], index: 1, kind: input, shape index: {}]   ;;  %s593_s2 = inlined_call_operand.vmem [shape: f32[1,128], index: 2, kind: input, shape index: {}]   ;;  %s594_s3 = inlined_call_operand.vmem [shape: f32[1,128], index: 3, kind: input, shape index: {}]   ;;  %s595_s0 = inlined_call_operand.vmem [shape: bf16[128,128], index: 0, kind: input, shape index: {}]   ;;  %s596_s4 = inlined_call_operand.vmem [shape: f32[128,128], index: 4, kind: output, shape index: {}]  }
   0x1   :  { %v420_v0 = vld [vmem:[%s592_s1 + $0x38] sm:$0xff]  ;;  %v419_v1 = vld [vmem:[%s592_s1 + $0x30] sm:$0xff]  ;;  %v418_v2 = vld [vmem:[%s592_s1 + $0x28] sm:$0xff] }
   0x2   :  { %181 = vmatpush.bf16.msra.mxu0 %v420_v0  ;;  %421 = vmatpush.bf16.msra.mxu1 %v420_v0  ;;  %v417_v3 = vld [vmem:[%s592_s1 + $0x20] sm:$0xff]  ;;  %v416_v4 = vld [vmem:[%s592_s1 + $0x18] sm:$0xff]  ;;  %v415_v5 = vld [vmem:[%s592_s1 + $0x10] sm:$0xff] }
   0x3   :  { %422 = vmatpush.bf16.msra.mxu2 %v420_v0  ;;  %423 = vmatpush.bf16.msra.mxu3 %v420_v0  ;;  %v414_v6 = vld [vmem:[%s592_s1 + $0x8] sm:$0xff]  ;;  %v413_v7 = vld [vmem:[%s592_s1] sm:$0xff]  ;;  %v407_v9 = vld [vmem:[%s595_s0 + $0x10] sm:$0xff] }
   0x4   :  { %v405_v8 = vld [vmem:[%s595_s0] sm:$0xff]  ;;  %v411_v11 = vld [vmem:[%s595_s0 + $0x30] sm:$0xff]  ;;  %v406_v12 = vld [vmem:[%s595_s0 + $0x8] sm:$0xff] }
   0x5   :  { %v409_v10 = vld [vmem:[%s595_s0 + $0x20] sm:$0xff]  ;;  %v408_v13 = vld [vmem:[%s595_s0 + $0x18] sm:$0xff]  ;;  %v410_v14 = vld [vmem:[%s595_s0 + $0x28] sm:$0xff] }
   0x6   :  { %182 = vmatpush.bf16.msra.mxu0 %v419_v1  ;;  %424 = vmatpush.bf16.msra.mxu1 %v419_v1  ;;  %v412_v15 = vld [vmem:[%s595_s0 + $0x38] sm:$0xff]  ;;  %v445_v16 = vld [vmem:[%s593_s2] ss:$0 sm:$0xff] }
   0x7   :  { %425 = vmatpush.bf16.msra.mxu2 %v419_v1  ;;  %426 = vmatpush.bf16.msra.mxu3 %v419_v1  ;;  %v526_v17 = vld [vmem:[%s594_s3] ss:$0 sm:$0xff] }
   0xa   :  { %183 = vmatpush.bf16.msra.mxu0 %v418_v2  ;;  %427 = vmatpush.bf16.msra.mxu1 %v418_v2 }
   0xb   :  { %428 = vmatpush.bf16.msra.mxu2 %v418_v2  ;;  %429 = vmatpush.bf16.msra.mxu3 %v418_v2 }
   0xe   :  { %184 = vmatpush.bf16.msra.mxu0 %v417_v3  ;;  %430 = vmatpush.bf16.msra.mxu1 %v417_v3 }
   0xf   :  { %431 = vmatpush.bf16.msra.mxu2 %v417_v3  ;;  %432 = vmatpush.bf16.msra.mxu3 %v417_v3 }
  0x12   :  { %185 = vmatpush.bf16.msra.mxu0 %v416_v4  ;;  %433 = vmatpush.bf16.msra.mxu1 %v416_v4 }
  0x13   :  { %434 = vmatpush.bf16.msra.mxu2 %v416_v4  ;;  %435 = vmatpush.bf16.msra.mxu3 %v416_v4 }
  0x16   :  { %186 = vmatpush.bf16.msra.mxu0 %v415_v5  ;;  %436 = vmatpush.bf16.msra.mxu1 %v415_v5 }
  0x17   :  { %437 = vmatpush.bf16.msra.mxu2 %v415_v5  ;;  %438 = vmatpush.bf16.msra.mxu3 %v415_v5 }
  0x1a   :  { %187 = vmatpush.bf16.msra.mxu0 %v414_v6  ;;  %439 = vmatpush.bf16.msra.mxu1 %v414_v6 }
  0x1b   :  { %440 = vmatpush.bf16.msra.mxu2 %v414_v6  ;;  %441 = vmatpush.bf16.msra.mxu3 %v414_v6 }
  0x1e   :  { %188 = vmatpush.bf16.msra.mxu0 %v413_v7  ;;  %442 = vmatpush.bf16.msra.mxu1 %v413_v7 }
  0x1f   :  { %443 = vmatpush.bf16.msra.mxu2 %v413_v7  ;;  %444 = vmatpush.bf16.msra.mxu3 %v413_v7 }
  0x21   :  { %189 = vmatmul.bf16.vlgmr.msra.gmra.mxu0 %v405_v8  ;;  %199 = vmatmul.bf16.vlgmr.msra.gmra.mxu1 %v407_v9 }
  0x22   :  { %209 = vmatmul.bf16.vlgmr.msra.gmra.mxu2 %v409_v10  ;;  %219 = vmatmul.bf16.vlgmr.msra.gmra.mxu3 %v411_v11 }
  0x31   :  { %194 = vmatmul.bf16.gmra.mxu0 %v406_v12  ;;  %204 = vmatmul.bf16.gmra.mxu1 %v408_v13 }
  0x32   :  { %214 = vmatmul.bf16.gmra.mxu2 %v410_v14  ;;  %224 = vmatmul.bf16.gmra.mxu3 %v412_v15 }
  0x9e   :  { %v190_v18 = vpop.f32.mrf.mxu0  ;;  %v200_v19 = vpop.f32.mrf.mxu1 }
  0x9f   :  { %v285_v20 = vmul.f32 %v445_v16, %v190_v18  ;;  %v289_v21 = vmul.f32 %v445_v16, %v200_v19 }
  0xa1   :  { %v305_v22 = vadd.f32 %v526_v17, %v285_v20  ;;  %v309_v23 = vadd.f32 %v526_v17, %v289_v21 }
  0xa3   :  { %321 = vst [vmem:[%s596_s4] sm:$0xff] %v305_v22 }
  0xa4   :  { %325 = vst [vmem:[%s596_s4 + $0x20] sm:$0xff] %v309_v23 }
  0xa5   :  { %v210_v24 = vpop.f32.mrf.mxu2  ;;  %v220_v25 = vpop.f32.mrf.mxu3 }
  0xa6   :  { %v293_v26 = vmul.f32 %v445_v16, %v210_v24  ;;  %v297_v27 = vmul.f32 %v445_v16, %v220_v25  ;;  %v192_v28 = vpop.f32.mrf.mxu0  ;;  %v202_v29 = vpop.f32.mrf.mxu1 }
  0xa7   :  { %v286_v30 = vmul.f32 %v445_v16, %v192_v28  ;;  %v290_v31 = vmul.f32 %v445_v16, %v202_v29 }
  0xa8   :  { %v313_v32 = vadd.f32 %v526_v17, %v293_v26  ;;  %v317_v33 = vadd.f32 %v526_v17, %v297_v27 }
  0xa9   :  { %v306_v34 = vadd.f32 %v526_v17, %v286_v30  ;;  %v310_v35 = vadd.f32 %v526_v17, %v290_v31 }
  0xaa   :  { %329 = vst [vmem:[%s596_s4 + $0x40] sm:$0xff] %v313_v32 }
  0xab   :  { %333 = vst [vmem:[%s596_s4 + $0x60] sm:$0xff] %v317_v33 }
  0xac   :  { %322 = vst [vmem:[%s596_s4 + $0x8] sm:$0xff] %v306_v34 }
  0xad   :  { %326 = vst [vmem:[%s596_s4 + $0x28] sm:$0xff] %v310_v35  ;;  %v212_v36 = vpop.f32.mrf.mxu2  ;;  %v222_v37 = vpop.f32.mrf.mxu3 }
  0xae   :  { %v294_v38 = vmul.f32 %v445_v16, %v212_v36  ;;  %v298_v39 = vmul.f32 %v445_v16, %v222_v37  ;;  %v195_v40 = vpop.f32.mrf.mxu0  ;;  %v205_v41 = vpop.f32.mrf.mxu1 }
  0xaf   :  { %v287_v42 = vmul.f32 %v445_v16, %v195_v40  ;;  %v291_v43 = vmul.f32 %v445_v16, %v205_v41 }
  0xb0   :  { %v314_v44 = vadd.f32 %v526_v17, %v294_v38  ;;  %v318_v45 = vadd.f32 %v526_v17, %v298_v39 }
  0xb1   :  { %v307_v46 = vadd.f32 %v526_v17, %v287_v42  ;;  %v311_v47 = vadd.f32 %v526_v17, %v291_v43 }
  0xb2   :  { %330 = vst [vmem:[%s596_s4 + $0x48] sm:$0xff] %v314_v44 }
  0xb3   :  { %334 = vst [vmem:[%s596_s4 + $0x68] sm:$0xff] %v318_v45 }
  0xb4   :  { %323 = vst [vmem:[%s596_s4 + $0x10] sm:$0xff] %v307_v46 }
  0xb5   :  { %327 = vst [vmem:[%s596_s4 + $0x30] sm:$0xff] %v311_v47  ;;  %v215_v48 = vpop.f32.mrf.mxu2  ;;  %v225_v49 = vpop.f32.mrf.mxu3 }
  0xb6   :  { %v295_v50 = vmul.f32 %v445_v16, %v215_v48  ;;  %v299_v51 = vmul.f32 %v445_v16, %v225_v49  ;;  %v197_v52 = vpop.f32.mrf.mxu0  ;;  %v207_v53 = vpop.f32.mrf.mxu1 }
  0xb7   :  { %v288_v54 = vmul.f32 %v445_v16, %v197_v52  ;;  %v292_v55 = vmul.f32 %v445_v16, %v207_v53 }
  0xb8   :  { %v315_v56 = vadd.f32 %v526_v17, %v295_v50  ;;  %v319_v57 = vadd.f32 %v526_v17, %v299_v51 }
  0xb9   :  { %v308_v58 = vadd.f32 %v526_v17, %v288_v54  ;;  %v312_v59 = vadd.f32 %v526_v17, %v292_v55 }
  0xba   :  { %331 = vst [vmem:[%s596_s4 + $0x50] sm:$0xff] %v315_v56 }
  0xbb   :  { %335 = vst [vmem:[%s596_s4 + $0x70] sm:$0xff] %v319_v57 }
  0xbc   :  { %324 = vst [vmem:[%s596_s4 + $0x18] sm:$0xff] %v308_v58 }
  0xbd   :  { %328 = vst [vmem:[%s596_s4 + $0x38] sm:$0xff] %v312_v59  ;;  %v217_v60 = vpop.f32.mrf.mxu2  ;;  %v227_v61 = vpop.f32.mrf.mxu3 }
  0xbe   :  { %v296_v62 = vmul.f32 %v445_v16, %v217_v60  ;;  %v300_v63 = vmul.f32 %v445_v16, %v227_v61 }
  0xc0   :  { %v316_v0 = vadd.f32 %v526_v17, %v296_v62  ;;  %v320_v1 = vadd.f32 %v526_v17, %v300_v63 }
  0xc2   :  { %332 = vst [vmem:[%s596_s4 + $0x58] sm:$0xff] %v316_v0 }
  0xc3   :  { %336 = vst [vmem:[%s596_s4 + $0x78] sm:$0xff] %v320_v1 }

// kernel: encoder_cnn_forward.14
= control target key start
LH: loop header
LB: loop body
LE: loop exit
PB: predicated region body
PF: predicated region fallthrough
CT: control target
= control target key end

     0   :  { %v125_v0 = vmov 0.0   ;;  %vm109_vm0 = vcmask 1041409   ;;  %s240_s0 = inlined_call_operand.vmem [shape: f32[2,64,128], index: 0, kind: input, shape index: {}]   ;;  %s241_s1 = inlined_call_operand.vmem [shape: f32[2,64,128], index: 1, kind: input, shape index: {}]   ;;  %s242_s2 = inlined_call_operand.vmem [shape: f32[2,128], index: 2, kind: output, shape index: {}]  }
   0x1   :  { %15 = vst [vmem:[#allocation2] sm:$0x3] %v125_v0  ;;  %v16_v1 = vld [vmem:[%s240_s0] sm:$0xff]  ;;  %v17_v2 = vld [vmem:[%s240_s0 + $0x8] sm:$0xff]  ;;  %v18_v3 = vld [vmem:[%s240_s0 + $0x10] sm:$0xff] }
   0x2   :  { %v24_v4 = vld [vmem:[%s240_s0 + $0x40] sm:$0xff]  ;;  %v33_v6 = vld [vmem:[%s241_s1 + $0x8] sm:$0xff]  ;;  %v26_v8 = vld [vmem:[%s240_s0 + $0x50] sm:$0xff] }
   0x3   :  { %v32_v5 = vld [vmem:[%s241_s1] sm:$0xff]  ;;  %v25_v7 = vld [vmem:[%s240_s0 + $0x48] sm:$0xff]  ;;  %v34_v9 = vld [vmem:[%s241_s1 + $0x10] sm:$0xff]  ;;  %v49_v11 = vadd.f32 %v33_v6, %v17_v2 }
   0x4   :  { %v48_v10 = vadd.f32 %v32_v5, %v16_v1  ;;  %v19_v12 = vld [vmem:[%s240_s0 + $0x18] sm:$0xff]  ;;  %v40_v15 = vld [vmem:[%s241_s1 + $0x40] sm:$0xff]  ;;  %v41_v16 = vld [vmem:[%s241_s1 + $0x48] sm:$0xff]  ;;  %v50_v18 = vadd.f32 %v34_v9, %v18_v3 }
   0x5   :  { %v27_v13 = vld [vmem:[%s240_s0 + $0x58] sm:$0xff]  ;;  %v42_v17 = vld [vmem:[%s241_s1 + $0x50] sm:$0xff]  ;;  %v20_v19 = vld [vmem:[%s240_s0 + $0x20] sm:$0xff]  ;;  %v56_v22 = vadd.f32 %v40_v15, %v24_v4  ;;  %v57_v23 = vadd.f32 %v41_v16, %v25_v7  ;;  %v65_v29 = vmax.f32 %v49_v11, 0.0 }
   0x6   :  { %v35_v14 = vld [vmem:[%s241_s1 + $0x18] sm:$0xff]  ;;  %v36_v20 = vld [vmem:[%s241_s1 + $0x20] sm:$0xff]  ;;  %v58_v24 = vadd.f32 %v42_v17, %v26_v8  ;;  %v64_v28 = vmax.f32 %v48_v10, 0.0  ;;  %v21_v30 = vld [vmem:[%s240_s0 + $0x28] sm:$0xff]  ;;  %v66_v36 = vmax.f32 %v50_v18, 0.0 }
   0x7   :  { %v43_v21 = vld [vmem:[%s241_s1 + $0x58] sm:$0xff]  ;;  %v28_v25 = vld [vmem:[%s240_s0 + $0x60] sm:$0xff]  ;;  %v51_v27 = vadd.f32 %v35_v14, %v19_v12  ;;  %v37_v31 = vld [vmem:[%s241_s1 + $0x28] sm:$0xff]  ;;  %v52_v35 = vadd.f32 %v36_v20, %v20_v19  ;;  %v72_v37 = vmax.f32 %v56_v22, 0.0  ;;  %v73_v41 = vmax.f32 %v57_v23, 0.0 }
   0x8   :  { %v44_v26 = vld [vmem:[%s241_s1 + $0x60] sm:$0xff]  ;;  %v59_v32 = vadd.f32 %v43_v21, %v27_v13  ;;  %v29_v33 = vld [vmem:[%s240_s0 + $0x68] sm:$0xff]  ;;  %v22_v38 = vld [vmem:[%s240_s0 + $0x30] sm:$0xff]  ;;  %v74_v42 = vmax.f32 %v58_v24, 0.0  ;;  %v53_v45 = vadd.f32 %v37_v31, %v21_v30  ;;  %v81_v47 = vadd.f32 %v65_v29, %v64_v28 }
   0x9   :  { %v45_v34 = vld [vmem:[%s241_s1 + $0x68] sm:$0xff]  ;;  %v38_v39 = vld [vmem:[%s241_s1 + $0x30] sm:$0xff]  ;;  %v60_v40 = vadd.f32 %v44_v26, %v28_v25  ;;  %v67_v46 = vmax.f32 %v51_v27, 0.0  ;;  %v23_v48 = vld [vmem:[%s240_s0 + $0x38] sm:$0xff]  ;;  %v94_v52 = vadd.f32 %v73_v41, %v72_v37  ;;  %v68_v56 = vmax.f32 %v52_v35, 0.0 }
   0xa   :  { %v30_v43 = vld [vmem:[%s240_s0 + $0x70] sm:$0xff]  ;;  %v39_v49 = vld [vmem:[%s241_s1 + $0x38] sm:$0xff]  ;;  %v61_v50 = vadd.f32 %v45_v34, %v29_v33  ;;  %v75_v51 = vmax.f32 %v59_v32, 0.0  ;;  %v54_v55 = vadd.f32 %v38_v39, %v22_v38  ;;  %v82_v57 = vadd.f32 %v81_v47, %v66_v36  ;;  %v80_v26 = vld [vmem:[#allocation2] sm:$0x3] }
   0xb   :  { %v46_v44 = vld [vmem:[%s241_s1 + $0x70] sm:$0xff]  ;;  %v31_v53 = vld [vmem:[%s240_s0 + $0x78] sm:$0xff]  ;;  %v76_v59 = vmax.f32 %v60_v40, 0.0  ;;  %v95_v60 = vadd.f32 %v94_v52, %v74_v42  ;;  %v55_v61 = vadd.f32 %v39_v49, %v23_v48  ;;  %v69_v62 = vmax.f32 %v53_v45, 0.0 }
   0xc   :  { %v47_v54 = vld [vmem:[%s241_s1 + $0x78] sm:$0xff]  ;;  %v62_v58 = vadd.f32 %v46_v44, %v30_v43  ;;  %v83_v63 = vadd.f32 %v82_v57, %v67_v46  ;;  %v77_v1 = vmax.f32 %v61_v50, 0.0  ;;  %v70_v3 = vmax.f32 %v54_v55, 0.0 }
   0xd   :  { %v63_v0 = vadd.f32 %v47_v54, %v31_v53  ;;  %v96_v2 = vadd.f32 %v95_v60, %v75_v51  ;;  %v71_v7 = vmax.f32 %v55_v61, 0.0 }
   0xe   :  { %v84_v4 = vadd.f32 %v83_v63, %v68_v56  ;;  %v78_v5 = vmax.f32 %v62_v58, 0.0 }
   0xf   :  { %v97_v6 = vadd.f32 %v96_v2, %v76_v59  ;;  %v79_v9 = vmax.f32 %v63_v0, 0.0 }
  0x10   :  { %v85_v8 = vadd.f32 %v84_v4, %v69_v62 }
  0x11   :  { %v98_v10 = vadd.f32 %v97_v6, %v77_v1 }
  0x12   :  { %v86_v11 = vadd.f32 %v85_v8, %v70_v3 }
  0x13   :  { %v99_v12 = vadd.f32 %v98_v10, %v78_v5 }
  0x14   :  { %v87_v13 = vadd.f32 %v86_v11, %v71_v7 }
  0x15   :  { %v100_v14 = vadd.f32 %v99_v12, %v79_v9 }
  0x16   :  { %v88_v15 = vrot.slane %v87_v13, 4 }
  0x17   :  { %v101_v16 = vrot.slane %v100_v14, 4 }
  0x18   :  { %v89_v17 = vadd.f32 %v88_v15, %v87_v13 }
  0x19   :  { %v102_v18 = vadd.f32 %v101_v16, %v100_v14 }
  0x1a   :  { %v90_v19 = vrot.slane %v89_v17, 2 }
  0x1b   :  { %v103_v20 = vrot.slane %v102_v18, 2 }
  0x1c   :  { %v91_v21 = vadd.f32 %v90_v19, %v89_v17 }
  0x1d   :  { %v104_v22 = vadd.f32 %v103_v20, %v102_v18 }
  0x1e   :  { %v92_v23 = vrot.slane %v91_v21, 1 }
  0x1f   :  { %v105_v24 = vrot.slane %v104_v22, 1 }
  0x20   :  { %v93_v25 = vadd.f32 %v92_v23, %v91_v21 }
  0x21   :  { %v106_v27 = vadd.f32 %v105_v24, %v104_v22 }
  0x23   :  { %v110_v28 = vsel %vm109_vm0, %v106_v27, %v93_v25 }
  0x24   :  { %v112_v29 = vadd.f32 %v110_v28, %v80_v26 }
  0x26   :  { %113 = vst [vmem:[#allocation2] sm:$0x3] %v112_v29 }
  0x2d   :  { %v117_v30 = vld [vmem:[#allocation2] sm:$0x3] }
  0x2e   :  { %v118_v31 = vmul.f32 0.015625, %v117_v30 }
  0x30   :  { %119 = vst [vmem:[%s242_s2] sm:$0x3] %v118_v31 }

// kernel: encoder_cnn_forward.15
= control target key start
LH: loop header
LB: loop body
LE: loop exit
PB: predicated region body
PF: predicated region fallthrough
CT: control target
= control target key end

     0   :  { %s225_s1 = inlined_call_operand.vmem [shape: bf16[128,128], index: 1, kind: input, shape index: {}]   ;;  %s226_s2 = inlined_call_operand.vmem [shape: f32[1,128], index: 2, kind: input, shape index: {}]   ;;  %s227_s3 = inlined_call_operand.vmem [shape: f32[1,128], index: 3, kind: input, shape index: {}]   ;;  %s228_s0 = inlined_call_operand.vmem [shape: bf16[8,128], index: 0, kind: input, shape index: {}]   ;;  %s229_s4 = inlined_call_operand.vmem [shape: f32[8,128], index: 4, kind: output, shape index: {}]  }
   0x1   :  { %v161_v0 = vld [vmem:[%s225_s1 + $0x38] sm:$0xff]  ;;  %v160_v1 = vld [vmem:[%s225_s1 + $0x30] sm:$0xff]  ;;  %v159_v2 = vld [vmem:[%s225_s1 + $0x28] sm:$0xff] }
   0x2   :  { %88 = vmatpush.bf16.msra.mxu0 %v161_v0  ;;  %v158_v3 = vld [vmem:[%s225_s1 + $0x20] sm:$0xff]  ;;  %v157_v4 = vld [vmem:[%s225_s1 + $0x18] sm:$0xff]  ;;  %v156_v5 = vld [vmem:[%s225_s1 + $0x10] sm:$0xff] }
   0x3   :  { %v155_v6 = vld [vmem:[%s225_s1 + $0x8] sm:$0xff]  ;;  %v154_v7 = vld [vmem:[%s225_s1] sm:$0xff] }
   0x4   :  { %v23_v8 = vld [vmem:[%s228_s0] sm:$0xf] }
   0x5   :  { %v162_v9 = vld [vmem:[%s226_s2] ss:$0 sm:$0xff] }
   0x6   :  { %89 = vmatpush.bf16.msra.mxu0 %v160_v1  ;;  %v163_v10 = vld [vmem:[%s227_s3] ss:$0 sm:$0xff] }
   0xa   :  { %90 = vmatpush.bf16.msra.mxu0 %v159_v2 }
   0xe   :  { %91 = vmatpush.bf16.msra.mxu0 %v158_v3 }
  0x12   :  { %92 = vmatpush.bf16.msra.mxu0 %v157_v4 }
  0x16   :  { %93 = vmatpush.bf16.msra.mxu0 %v156_v5 }
  0x1a   :  { %94 = vmatpush.bf16.msra.mxu0 %v155_v6 }
  0x1e   :  { %95 = vmatpush.bf16.msra.mxu0 %v154_v7 }
  0x21   :  { %96 = vmatmul.bf16.vlgmr.msra.gmra.mxu0 %v23_v8 }
  0x9e   :  { %v97_v11 = vpop.f32.mrf.mxu0 }
  0x9f   :  { %v111_v12 = vmul.f32 %v162_v9, %v97_v11 }
  0xa1   :  { %v116_v13 = vadd.f32 %v163_v10, %v111_v12 }
  0xa3   :  { %117 = vst [vmem:[%s229_s4] sm:$0xff] %v116_v13 }
  0xa6   :  { %v99_v14 = vpop.f32.mrf.mxu0 }

</bundles_post_ra>
